<compile_context>
chip_gen: v6e
topology: v6e:2x2x1
jax: 0.10.0
libtpu: 0.0.40
codegen_flags: <defaults>
</compile_context>

<pallas_src>
import functools

import numpy as np
import jax
import jax.numpy as jnp
from jax import lax
from jax.experimental import pallas as pl
from jax.experimental.pallas import tpu as pltpu


# --------------------------------------------------------------------------
# Pallas kernel: one grid step = TB batch elements (weights stay VMEM-resident
# across the whole grid; batch axis is marked "parallel" for megacore).
# --------------------------------------------------------------------------
def bam_kernel(x_ref, w1_ref, b1_ref, w2_ref, b2_ref,
               wr_ref, br_ref, mask_ref,
               wd0_ref, bd0_ref, wd1_ref, bd1_ref,
               wf_ref, bf_ref, o_ref, *, W, dil):
    f32 = jnp.float32
    TB = x_ref.shape[0]
    HW = x_ref.shape[2]
    # flat-index offsets of the 9 dilated-conv taps; order must match the
    # fused tap weights (fold_params) and the border masks (_tap_masks).
    offs = [dh * W + dw for dh in (-dil, 0, dil) for dw in (-dil, 0, dil)]

    w1, b1 = w1_ref[...], b1_ref[...]
    w2, b2 = w2_ref[...], b2_ref[...]
    wr, br = wr_ref[...], br_ref[...]
    wf, bf = wf_ref[...], bf_ref[...]
    wd0, bd0 = wd0_ref[...], bd0_ref[...]
    wd1, bd1 = wd1_ref[...], bd1_ref[...]
    tap_masks = [mask_ref[t] for t in range(9)]              # each [1, HW]

    def dilated(s_in, wd, bd):
        # 9 taps = static lane rolls (XLU) + zero masks at the image border,
        # concatenated along the sublane-aligned channel dim so the whole
        # layer is a single MXU matmul: [CmP, 9*CmP] @ [9*CmP, HW].
        pieces = []
        for t, off in enumerate(offs):
            shift = (-off) % HW
            y = pltpu.roll(s_in, shift=shift, axis=1) if shift else s_in
            pieces.append(y * tap_masks[t])                  # [CmP, HW]
        cat = jnp.concatenate(pieces, axis=0)                # [9*CmP, HW]
        return jnp.dot(wd, cat, preferred_element_type=f32) + bd

    for b in range(TB):                                      # static unroll
        xb = x_ref[b]                                        # [C, HW]

        # ---- channel gate: global-avg-pool -> fc(+BN folded) -> relu -> fc
        avg = jnp.mean(xb, axis=1, keepdims=True)            # [C, 1]
        h = jnp.maximum(
            jnp.dot(w1, avg, preferred_element_type=f32) + b1, 0.0)   # [CmP, 1]
        ch = jnp.dot(w2, h, preferred_element_type=f32) + b2          # [C, 1]

        # ---- spatial gate: 1x1 conv(+BN) -> relu -> 2x dilated 3x3 -> 1x1
        s = jnp.maximum(
            jnp.dot(wr, xb, preferred_element_type=f32) + br, 0.0)    # [CmP, HW]
        s = jnp.maximum(dilated(s, wd0, bd0), 0.0)
        s = jnp.maximum(dilated(s, wd1, bd1), 0.0)
        sp = jnp.dot(wf, s, preferred_element_type=f32) + bf          # [1, HW]

        # ---- BAM mask: sigmoid(channel_att * spatial_att) + 1
        o_ref[b] = jax.nn.sigmoid(ch * sp) + 1.0             # [C, HW]


def _pick_tb(B, cap=8):
    """Largest divisor of B that is <= cap (batch elements per grid step)."""
    tb = min(B, cap)
    while B % tb:
        tb -= 1
    return tb


def _tap_masks(H, W, dil):
    """[9, 1, HW] f32 validity masks ('same' padding) for the 9 dilated taps."""
    HW = H * W
    r = np.arange(HW) // W
    c = np.arange(HW) % W
    ms = []
    for dh in (-dil, 0, dil):
        for dw in (-dil, 0, dil):
            ok = (r + dh >= 0) & (r + dh < H) & (c + dw >= 0) & (c + dw < W)
            ms.append(ok.astype(np.float32))
    return jnp.asarray(np.stack(ms)[:, None, :])


def bam_mask_pallas(x_nchw, params, dil=4):
    B, C, H, W = x_nchw.shape
    HW = H * W
    x = x_nchw.reshape(B, C, HW)                             # free (no transpose)
    TB = _pick_tb(B)
    masks = _tap_masks(H, W, dil)

    weight_args = (params['w1f'], params['b1f'], params['w2p'], params['b2c'],
                   params['wrf'], params['brf'], masks,
                   params['wd0f'], params['bd0f'], params['wd1f'], params['bd1f'],
                   params['wff'], params['bfc'])

    def const_spec(a):
        return pl.BlockSpec(a.shape, lambda g, _nd=a.ndim: (0,) * _nd)

    kernel = functools.partial(bam_kernel, W=W, dil=dil)

    out = pl.pallas_call(
        kernel,
        out_shape=jax.ShapeDtypeStruct((B, C, HW), jnp.float32),
        grid=(B // TB,),
        in_specs=[pl.BlockSpec((TB, C, HW), lambda g: (g, 0, 0))]
                 + [const_spec(a) for a in weight_args],
        out_specs=pl.BlockSpec((TB, C, HW), lambda g: (g, 0, 0)),
        compiler_params=pltpu.CompilerParams(
            dimension_semantics=("parallel",)),
    )(x, *weight_args)

    return out.reshape(B, C, H, W)                           # free


# --------------------------------------------------------------------------
# Deterministic parameter init (PyTorch module shapes, paper=False branch)
# --------------------------------------------------------------------------
def init_raw_params(key, C, reduction_ratio=16):
    Cm = max(C // reduction_ratio, 1)
    ks = iter(jax.random.split(key, 32))

    def nrm(shape, scale=0.3):
        return scale * jax.random.normal(next(ks), shape, dtype=jnp.float32)

    def bn(n):
        g = 1.0 + 0.1 * jax.random.normal(next(ks), (n,), dtype=jnp.float32)
        b = nrm((n,), 0.1)
        m = nrm((n,), 0.1)
        v = 1.0 + 0.1 * jnp.abs(jax.random.normal(next(ks), (n,), dtype=jnp.float32))
        return g, b, m, v

    p = {}
    # ChannelGate: Linear(C, Cm) -> BN1d(Cm) -> ReLU -> Linear(Cm, C)
    p['w1'], p['b1'] = nrm((Cm, C)), nrm((Cm,))
    p['bn1_g'], p['bn1_b'], p['bn1_m'], p['bn1_v'] = bn(Cm)
    p['w2'], p['b2'] = nrm((C, Cm)), nrm((C,))
    # SpatialGate: Conv1x1(C,Cm)+BN -> ReLU -> 2x [Conv3x3 dil=4 (Cm,Cm)+BN -> ReLU]
    #              -> Conv1x1(Cm,1)
    p['wr'], p['br'] = nrm((Cm, C)), nrm((Cm,))
    p['bnr_g'], p['bnr_b'], p['bnr_m'], p['bnr_v'] = bn(Cm)
    for i in range(2):
        p[f'wd{i}'], p[f'bd{i}'] = nrm((Cm, Cm, 3, 3)), nrm((Cm,))
        p[f'bnd{i}_g'], p[f'bnd{i}_b'], p[f'bnd{i}_m'], p[f'bnd{i}_v'] = bn(Cm)
    p['wf'], p['bf'] = nrm((1, Cm)), nrm((1,))
    return p


def fold_params(p, eps=1e-5, sub=8):
    """Fold eval-mode BN into preceding weights, fuse the 9 dilated-conv taps
    into one [CmP, 9*CmP] matrix, and zero-pad the reduced channel dim to a
    full sublane tile (CmP).  All weights stay in [out, in] (column) layout."""
    C, Cm = p['w2'].shape
    CmP = max(-(-Cm // sub) * sub, sub)

    def padr(a):                                  # pad axis 0: Cm -> CmP
        return jnp.pad(a, ((0, CmP - a.shape[0]),) + ((0, 0),) * (a.ndim - 1))

    def fold(w, b, g, beta, m, v):                # BN folded into [O, I] weight
        s = g / jnp.sqrt(v + eps)
        return w * s[:, None], ((b - m) * s + beta)[:, None]

    w1f, b1f = fold(p['w1'], p['b1'], p['bn1_g'], p['bn1_b'], p['bn1_m'], p['bn1_v'])
    wrf, brf = fold(p['wr'], p['br'], p['bnr_g'], p['bnr_b'], p['bnr_m'], p['bnr_v'])

    def fold3(w, b, g, beta, m, v):
        s = g / jnp.sqrt(v + eps)
        ws = w * s[:, None, None, None]                           # [Cm, Cm, 3, 3]
        taps = [jnp.pad(ws[:, :, kh, kw], ((0, CmP - Cm), (0, CmP - Cm)))
                for kh in range(3) for kw in range(3)]            # 9 x [CmP, CmP]
        return jnp.concatenate(taps, axis=1), padr(((b - m) * s + beta)[:, None])

    wd0f, bd0f = fold3(p['wd0'], p['bd0'], p['bnd0_g'], p['bnd0_b'],
                       p['bnd0_m'], p['bnd0_v'])
    wd1f, bd1f = fold3(p['wd1'], p['bd1'], p['bnd1_g'], p['bnd1_b'],
                       p['bnd1_m'], p['bnd1_v'])

    return dict(
        w1f=padr(w1f), b1f=padr(b1f),
        w2p=jnp.pad(p['w2'], ((0, 0), (0, CmP - Cm))), b2c=p['b2'][:, None],
        wrf=padr(wrf), brf=padr(brf),
        wd0f=wd0f, bd0f=bd0f, wd1f=wd1f, bd1f=bd1f,
        wff=jnp.pad(p['wf'], ((0, 0), (0, CmP - Cm))), bfc=p['bf'][:, None])


# --------------------------------------------------------------------------
# Pure-JAX reference (mirrors the PyTorch forward, eval-mode BN, unfolded)
# --------------------------------------------------------------------------
def bam_mask_ref(x, p, dilation=4, eps=1e-5):
    B, C, H, W = x.shape
    # channel gate
    avg = jnp.mean(x, axis=(2, 3))                              # [B, C]
    h = avg @ p['w1'].T + p['b1']
    h = (h - p['bn1_m']) / jnp.sqrt(p['bn1_v'] + eps) * p['bn1_g'] + p['bn1_b']
    h = jnp.maximum(h, 0.0)
    ch = h @ p['w2'].T + p['b2']                                # [B, C]

    # spatial gate
    def bn2d(v, g, b, m, var):
        rs = lambda a: a.reshape(1, -1, 1, 1)
        return (v - rs(m)) / jnp.sqrt(rs(var) + eps) * rs(g) + rs(b)

    s = jnp.einsum('bchw,oc->bohw', x, p['wr']) + p['br'].reshape(1, -1, 1, 1)
    s = jnp.maximum(bn2d(s, p['bnr_g'], p['bnr_b'], p['bnr_m'], p['bnr_v']), 0.0)
    for i in range(2):
        s = lax.conv_general_dilated(
            s, p[f'wd{i}'], window_strides=(1, 1),
            padding=((dilation, dilation), (dilation, dilation)),
            rhs_dilation=(dilation, dilation),
            dimension_numbers=('NCHW', 'OIHW', 'NCHW')) + p[f'bd{i}'].reshape(1, -1, 1, 1)
        s = jnp.maximum(bn2d(s, p[f'bnd{i}_g'], p[f'bnd{i}_b'],
                             p[f'bnd{i}_m'], p[f'bnd{i}_v']), 0.0)
    sp = jnp.einsum('bchw,oc->bohw', s, p['wf']) + p['bf'].reshape(1, -1, 1, 1)  # [B,1,H,W]

    com = ch[:, :, None, None] * sp
    return jax.nn.sigmoid(com) + 1.0


if __name__ == "__main__":
    B, C, H, W = 2, 32, 16, 16        # C must be >= 16 so that C // 16 >= 1
    key = jax.random.PRNGKey(0)
    kx, kp = jax.random.split(key)
    x = jax.random.normal(kx, (B, C, H, W), dtype=jnp.float32)

    raw = init_raw_params(kp, C)
    params = fold_params(raw)

    out = bam_mask_pallas(x, params)
    out = jax.block_until_ready(out)

    ref = bam_mask_ref(x, raw)
    assert out.shape == x.shape
    np.testing.assert_allclose(np.asarray(out), np.asarray(ref), rtol=1e-4, atol=1e-4)
    print("KERNEL_OK")
</pallas_src>

<mosaic_0001>
module attributes {stable_mosaic.version = 11 : i64} {
  func.func @bam_kernel(%arg0: i32, %arg1: memref<2x32x256xf32, #tpu.memory_space<vmem>>, %arg2: memref<8x32xf32, #tpu.memory_space<vmem>>, %arg3: memref<8x1xf32, #tpu.memory_space<vmem>>, %arg4: memref<32x8xf32, #tpu.memory_space<vmem>>, %arg5: memref<32x1xf32, #tpu.memory_space<vmem>>, %arg6: memref<8x32xf32, #tpu.memory_space<vmem>>, %arg7: memref<8x1xf32, #tpu.memory_space<vmem>>, %arg8: memref<9x1x256xf32, #tpu.memory_space<vmem>>, %arg9: memref<8x72xf32, #tpu.memory_space<vmem>>, %arg10: memref<8x1xf32, #tpu.memory_space<vmem>>, %arg11: memref<8x72xf32, #tpu.memory_space<vmem>>, %arg12: memref<8x1xf32, #tpu.memory_space<vmem>>, %arg13: memref<1x8xf32, #tpu.memory_space<vmem>>, %arg14: memref<1x1xf32, #tpu.memory_space<vmem>>, %arg15: memref<2x32x256xf32, #tpu.memory_space<vmem>>) attributes {dimension_semantics = [#tpu.dimension_semantics<parallel>], iteration_bounds = array<i64: 1>, scalar_prefetch = 0 : i64, scratch_operands = 0 : i64, tpu.core_type = #tpu.core_type<tc>, window_params = [{transform_indices = @transform_0, window_bounds = array<i64: 2, 32, 256>}, {pipeline_mode = #tpu.pipeline_mode<synchronous>, transform_indices = @transform_1, window_bounds = array<i64: 8, 32>}, {pipeline_mode = #tpu.pipeline_mode<synchronous>, transform_indices = @transform_2, window_bounds = array<i64: 8, 1>}, {pipeline_mode = #tpu.pipeline_mode<synchronous>, transform_indices = @transform_3, window_bounds = array<i64: 32, 8>}, {pipeline_mode = #tpu.pipeline_mode<synchronous>, transform_indices = @transform_4, window_bounds = array<i64: 32, 1>}, {pipeline_mode = #tpu.pipeline_mode<synchronous>, transform_indices = @transform_5, window_bounds = array<i64: 8, 32>}, {pipeline_mode = #tpu.pipeline_mode<synchronous>, transform_indices = @transform_6, window_bounds = array<i64: 8, 1>}, {pipeline_mode = #tpu.pipeline_mode<synchronous>, transform_indices = @transform_7, window_bounds = array<i64: 9, 1, 256>}, {pipeline_mode = #tpu.pipeline_mode<synchronous>, transform_indices = @transform_8, window_bounds = array<i64: 8, 72>}, {pipeline_mode = #tpu.pipeline_mode<synchronous>, transform_indices = @transform_9, window_bounds = array<i64: 8, 1>}, {pipeline_mode = #tpu.pipeline_mode<synchronous>, transform_indices = @transform_10, window_bounds = array<i64: 8, 72>}, {pipeline_mode = #tpu.pipeline_mode<synchronous>, transform_indices = @transform_11, window_bounds = array<i64: 8, 1>}, {pipeline_mode = #tpu.pipeline_mode<synchronous>, transform_indices = @transform_12, window_bounds = array<i64: 1, 8>}, {pipeline_mode = #tpu.pipeline_mode<synchronous>, transform_indices = @transform_13, window_bounds = array<i64: 1, 1>}, {transform_indices = @transform_14, window_bounds = array<i64: 2, 32, 256>}]} {
    %c0 = arith.constant 0 : index
    %c0_0 = arith.constant 0 : index
    %0 = vector.load %arg2[%c0, %c0_0] : memref<8x32xf32, #tpu.memory_space<vmem>>, vector<8x32xf32>
    %c0_1 = arith.constant 0 : index
    %c0_2 = arith.constant 0 : index
    %1 = vector.load %arg3[%c0_1, %c0_2] : memref<8x1xf32, #tpu.memory_space<vmem>>, vector<8x1xf32>
    %c0_3 = arith.constant 0 : index
    %c0_4 = arith.constant 0 : index
    %2 = vector.load %arg4[%c0_3, %c0_4] : memref<32x8xf32, #tpu.memory_space<vmem>>, vector<32x8xf32>
    %c0_5 = arith.constant 0 : index
    %c0_6 = arith.constant 0 : index
    %3 = vector.load %arg5[%c0_5, %c0_6] : memref<32x1xf32, #tpu.memory_space<vmem>>, vector<32x1xf32>
    %c0_7 = arith.constant 0 : index
    %c0_8 = arith.constant 0 : index
    %4 = vector.load %arg6[%c0_7, %c0_8] : memref<8x32xf32, #tpu.memory_space<vmem>>, vector<8x32xf32>
    %c0_9 = arith.constant 0 : index
    %c0_10 = arith.constant 0 : index
    %5 = vector.load %arg7[%c0_9, %c0_10] : memref<8x1xf32, #tpu.memory_space<vmem>>, vector<8x1xf32>
    %c0_11 = arith.constant 0 : index
    %c0_12 = arith.constant 0 : index
    %6 = vector.load %arg13[%c0_11, %c0_12] : memref<1x8xf32, #tpu.memory_space<vmem>>, vector<1x8xf32>
    %c0_13 = arith.constant 0 : index
    %c0_14 = arith.constant 0 : index
    %7 = vector.load %arg14[%c0_13, %c0_14] : memref<1x1xf32, #tpu.memory_space<vmem>>, vector<1x1xf32>
    %c0_15 = arith.constant 0 : index
    %c0_16 = arith.constant 0 : index
    %8 = vector.load %arg9[%c0_15, %c0_16] : memref<8x72xf32, #tpu.memory_space<vmem>>, vector<8x72xf32>
    %c0_17 = arith.constant 0 : index
    %c0_18 = arith.constant 0 : index
    %9 = vector.load %arg10[%c0_17, %c0_18] : memref<8x1xf32, #tpu.memory_space<vmem>>, vector<8x1xf32>
    %c0_19 = arith.constant 0 : index
    %c0_20 = arith.constant 0 : index
    %10 = vector.load %arg11[%c0_19, %c0_20] : memref<8x72xf32, #tpu.memory_space<vmem>>, vector<8x72xf32>
    %c0_21 = arith.constant 0 : index
    %c0_22 = arith.constant 0 : index
    %11 = vector.load %arg12[%c0_21, %c0_22] : memref<8x1xf32, #tpu.memory_space<vmem>>, vector<8x1xf32>
    %c0_23 = arith.constant 0 : index
    %c0_24 = arith.constant 0 : index
    %c0_25 = arith.constant 0 : index
    %12 = vector.load %arg8[%c0_23, %c0_24, %c0_25] : memref<9x1x256xf32, #tpu.memory_space<vmem>>, vector<1x1x256xf32>
    %13 = vector.shape_cast %12 : vector<1x1x256xf32> to vector<1x256xf32>
    %c1 = arith.constant 1 : index
    %c0_26 = arith.constant 0 : index
    %c0_27 = arith.constant 0 : index
    %14 = vector.load %arg8[%c1, %c0_26, %c0_27] : memref<9x1x256xf32, #tpu.memory_space<vmem>>, vector<1x1x256xf32>
    %15 = vector.shape_cast %14 : vector<1x1x256xf32> to vector<1x256xf32>
    %c2 = arith.constant 2 : index
    %c0_28 = arith.constant 0 : index
    %c0_29 = arith.constant 0 : index
    %16 = vector.load %arg8[%c2, %c0_28, %c0_29] : memref<9x1x256xf32, #tpu.memory_space<vmem>>, vector<1x1x256xf32>
    %17 = vector.shape_cast %16 : vector<1x1x256xf32> to vector<1x256xf32>
    %c3 = arith.constant 3 : index
    %c0_30 = arith.constant 0 : index
    %c0_31 = arith.constant 0 : index
    %18 = vector.load %arg8[%c3, %c0_30, %c0_31] : memref<9x1x256xf32, #tpu.memory_space<vmem>>, vector<1x1x256xf32>
    %19 = vector.shape_cast %18 : vector<1x1x256xf32> to vector<1x256xf32>
    %c4 = arith.constant 4 : index
    %c0_32 = arith.constant 0 : index
    %c0_33 = arith.constant 0 : index
    %20 = vector.load %arg8[%c4, %c0_32, %c0_33] : memref<9x1x256xf32, #tpu.memory_space<vmem>>, vector<1x1x256xf32>
    %21 = vector.shape_cast %20 : vector<1x1x256xf32> to vector<1x256xf32>
    %c5 = arith.constant 5 : index
    %c0_34 = arith.constant 0 : index
    %c0_35 = arith.constant 0 : index
    %22 = vector.load %arg8[%c5, %c0_34, %c0_35] : memref<9x1x256xf32, #tpu.memory_space<vmem>>, vector<1x1x256xf32>
    %23 = vector.shape_cast %22 : vector<1x1x256xf32> to vector<1x256xf32>
    %c6 = arith.constant 6 : index
    %c0_36 = arith.constant 0 : index
    %c0_37 = arith.constant 0 : index
    %24 = vector.load %arg8[%c6, %c0_36, %c0_37] : memref<9x1x256xf32, #tpu.memory_space<vmem>>, vector<1x1x256xf32>
    %25 = vector.shape_cast %24 : vector<1x1x256xf32> to vector<1x256xf32>
    %c7 = arith.constant 7 : index
    %c0_38 = arith.constant 0 : index
    %c0_39 = arith.constant 0 : index
    %26 = vector.load %arg8[%c7, %c0_38, %c0_39] : memref<9x1x256xf32, #tpu.memory_space<vmem>>, vector<1x1x256xf32>
    %27 = vector.shape_cast %26 : vector<1x1x256xf32> to vector<1x256xf32>
    %c8 = arith.constant 8 : index
    %c0_40 = arith.constant 0 : index
    %c0_41 = arith.constant 0 : index
    %28 = vector.load %arg8[%c8, %c0_40, %c0_41] : memref<9x1x256xf32, #tpu.memory_space<vmem>>, vector<1x1x256xf32>
    %29 = vector.shape_cast %28 : vector<1x1x256xf32> to vector<1x256xf32>
    %c0_42 = arith.constant 0 : index
    %c0_43 = arith.constant 0 : index
    %c0_44 = arith.constant 0 : index
    %30 = vector.load %arg1[%c0_42, %c0_43, %c0_44] : memref<2x32x256xf32, #tpu.memory_space<vmem>>, vector<1x32x256xf32>
    %31 = vector.shape_cast %30 : vector<1x32x256xf32> to vector<32x256xf32>
    %cst = arith.constant dense<0.000000e+00> : vector<32xf32>
    %32 = vector.multi_reduction <add>, %31, %cst [1] : vector<32x256xf32> to vector<32xf32>
    %33 = vector.shape_cast %32 : vector<32xf32> to vector<32x1xf32>
    %cst_45 = arith.constant 2.560000e+02 : f32
    %34 = vector.broadcast %cst_45 : f32 to vector<32x1xf32>
    %35 = arith.divf %33, %34 : vector<32x1xf32>
    %cst_46 = arith.constant dense<0.000000e+00> : vector<8x1xf32>
    %36 = tpu.matmul %0, %35, %cst_46 {dimension_numbers = #tpu.dot_dimension_numbers<[1], [0], [0], [1], [0, 0, 1, 1], [], []>} : vector<8x32xf32>, vector<32x1xf32>, vector<8x1xf32> -> vector<8x1xf32>
    %37 = arith.addf %36, %1 : vector<8x1xf32>
    %cst_47 = arith.constant 0.000000e+00 : f32
    %38 = vector.broadcast %cst_47 : f32 to vector<8x1xf32>
    %39 = arith.maximumf %37, %38 : vector<8x1xf32>
    %cst_48 = arith.constant dense<0.000000e+00> : vector<32x1xf32>
    %40 = tpu.matmul %2, %39, %cst_48 {dimension_numbers = #tpu.dot_dimension_numbers<[1], [0], [0], [1], [0, 0, 1, 1], [], []>} : vector<32x8xf32>, vector<8x1xf32>, vector<32x1xf32> -> vector<32x1xf32>
    %41 = arith.addf %40, %3 : vector<32x1xf32>
    %cst_49 = arith.constant dense<0.000000e+00> : vector<8x256xf32>
    %42 = tpu.matmul %4, %31, %cst_49 {dimension_numbers = #tpu.dot_dimension_numbers<[1], [0], [0], [1], [0, 0, 1, 1], [], []>} : vector<8x32xf32>, vector<32x256xf32>, vector<8x256xf32> -> vector<8x256xf32>
    %43 = vector.broadcast %5 : vector<8x1xf32> to vector<8x256xf32>
    %44 = arith.addf %42, %43 : vector<8x256xf32>
    %cst_50 = arith.constant 0.000000e+00 : f32
    %45 = vector.broadcast %cst_50 : f32 to vector<8x256xf32>
    %46 = arith.maximumf %44, %45 : vector<8x256xf32>
    %c68_i32 = arith.constant 68 : i32
    %47 = tpu.dynamic_rotate %46 by %c68_i32 dim 1 : vector<8x256xf32>, i32 -> vector<8x256xf32>
    %48 = vector.broadcast %13 : vector<1x256xf32> to vector<8x256xf32>
    %49 = arith.mulf %47, %48 : vector<8x256xf32>
    %c64_i32 = arith.constant 64 : i32
    %50 = tpu.dynamic_rotate %46 by %c64_i32 dim 1 : vector<8x256xf32>, i32 -> vector<8x256xf32>
    %51 = vector.broadcast %15 : vector<1x256xf32> to vector<8x256xf32>
    %52 = arith.mulf %50, %51 : vector<8x256xf32>
    %c60_i32 = arith.constant 60 : i32
    %53 = tpu.dynamic_rotate %46 by %c60_i32 dim 1 : vector<8x256xf32>, i32 -> vector<8x256xf32>
    %54 = vector.broadcast %17 : vector<1x256xf32> to vector<8x256xf32>
    %55 = arith.mulf %53, %54 : vector<8x256xf32>
    %c4_i32 = arith.constant 4 : i32
    %56 = tpu.dynamic_rotate %46 by %c4_i32 dim 1 : vector<8x256xf32>, i32 -> vector<8x256xf32>
    %57 = vector.broadcast %19 : vector<1x256xf32> to vector<8x256xf32>
    %58 = arith.mulf %56, %57 : vector<8x256xf32>
    %59 = vector.broadcast %21 : vector<1x256xf32> to vector<8x256xf32>
    %60 = arith.mulf %46, %59 : vector<8x256xf32>
    %c252_i32 = arith.constant 252 : i32
    %61 = tpu.dynamic_rotate %46 by %c252_i32 dim 1 : vector<8x256xf32>, i32 -> vector<8x256xf32>
    %62 = vector.broadcast %23 : vector<1x256xf32> to vector<8x256xf32>
    %63 = arith.mulf %61, %62 : vector<8x256xf32>
    %c196_i32 = arith.constant 196 : i32
    %64 = tpu.dynamic_rotate %46 by %c196_i32 dim 1 : vector<8x256xf32>, i32 -> vector<8x256xf32>
    %65 = vector.broadcast %25 : vector<1x256xf32> to vector<8x256xf32>
    %66 = arith.mulf %64, %65 : vector<8x256xf32>
    %c192_i32 = arith.constant 192 : i32
    %67 = tpu.dynamic_rotate %46 by %c192_i32 dim 1 : vector<8x256xf32>, i32 -> vector<8x256xf32>
    %68 = vector.broadcast %27 : vector<1x256xf32> to vector<8x256xf32>
    %69 = arith.mulf %67, %68 : vector<8x256xf32>
    %c188_i32 = arith.constant 188 : i32
    %70 = tpu.dynamic_rotate %46 by %c188_i32 dim 1 : vector<8x256xf32>, i32 -> vector<8x256xf32>
    %71 = vector.broadcast %29 : vector<1x256xf32> to vector<8x256xf32>
    %72 = arith.mulf %70, %71 : vector<8x256xf32>
    %73 = tpu.concatenate %49, %52, %55, %58, %60, %63, %66, %69, %72 in 0 : vector<8x256xf32>, vector<8x256xf32>, vector<8x256xf32>, vector<8x256xf32>, vector<8x256xf32>, vector<8x256xf32>, vector<8x256xf32>, vector<8x256xf32>, vector<8x256xf32> -> vector<72x256xf32>
    %cst_51 = arith.constant dense<0.000000e+00> : vector<8x256xf32>
    %74 = tpu.matmul %8, %73, %cst_51 {dimension_numbers = #tpu.dot_dimension_numbers<[1], [0], [0], [1], [0, 0, 1, 1], [], []>} : vector<8x72xf32>, vector<72x256xf32>, vector<8x256xf32> -> vector<8x256xf32>
    %75 = vector.broadcast %9 : vector<8x1xf32> to vector<8x256xf32>
    %76 = arith.addf %74, %75 : vector<8x256xf32>
    %cst_52 = arith.constant 0.000000e+00 : f32
    %77 = vector.broadcast %cst_52 : f32 to vector<8x256xf32>
    %78 = arith.maximumf %76, %77 : vector<8x256xf32>
    %c68_i32_53 = arith.constant 68 : i32
    %79 = tpu.dynamic_rotate %78 by %c68_i32_53 dim 1 : vector<8x256xf32>, i32 -> vector<8x256xf32>
    %80 = vector.broadcast %13 : vector<1x256xf32> to vector<8x256xf32>
    %81 = arith.mulf %79, %80 : vector<8x256xf32>
    %c64_i32_54 = arith.constant 64 : i32
    %82 = tpu.dynamic_rotate %78 by %c64_i32_54 dim 1 : vector<8x256xf32>, i32 -> vector<8x256xf32>
    %83 = vector.broadcast %15 : vector<1x256xf32> to vector<8x256xf32>
    %84 = arith.mulf %82, %83 : vector<8x256xf32>
    %c60_i32_55 = arith.constant 60 : i32
    %85 = tpu.dynamic_rotate %78 by %c60_i32_55 dim 1 : vector<8x256xf32>, i32 -> vector<8x256xf32>
    %86 = vector.broadcast %17 : vector<1x256xf32> to vector<8x256xf32>
    %87 = arith.mulf %85, %86 : vector<8x256xf32>
    %c4_i32_56 = arith.constant 4 : i32
    %88 = tpu.dynamic_rotate %78 by %c4_i32_56 dim 1 : vector<8x256xf32>, i32 -> vector<8x256xf32>
    %89 = vector.broadcast %19 : vector<1x256xf32> to vector<8x256xf32>
    %90 = arith.mulf %88, %89 : vector<8x256xf32>
    %91 = vector.broadcast %21 : vector<1x256xf32> to vector<8x256xf32>
    %92 = arith.mulf %78, %91 : vector<8x256xf32>
    %c252_i32_57 = arith.constant 252 : i32
    %93 = tpu.dynamic_rotate %78 by %c252_i32_57 dim 1 : vector<8x256xf32>, i32 -> vector<8x256xf32>
    %94 = vector.broadcast %23 : vector<1x256xf32> to vector<8x256xf32>
    %95 = arith.mulf %93, %94 : vector<8x256xf32>
    %c196_i32_58 = arith.constant 196 : i32
    %96 = tpu.dynamic_rotate %78 by %c196_i32_58 dim 1 : vector<8x256xf32>, i32 -> vector<8x256xf32>
    %97 = vector.broadcast %25 : vector<1x256xf32> to vector<8x256xf32>
    %98 = arith.mulf %96, %97 : vector<8x256xf32>
    %c192_i32_59 = arith.constant 192 : i32
    %99 = tpu.dynamic_rotate %78 by %c192_i32_59 dim 1 : vector<8x256xf32>, i32 -> vector<8x256xf32>
    %100 = vector.broadcast %27 : vector<1x256xf32> to vector<8x256xf32>
    %101 = arith.mulf %99, %100 : vector<8x256xf32>
    %c188_i32_60 = arith.constant 188 : i32
    %102 = tpu.dynamic_rotate %78 by %c188_i32_60 dim 1 : vector<8x256xf32>, i32 -> vector<8x256xf32>
    %103 = vector.broadcast %29 : vector<1x256xf32> to vector<8x256xf32>
    %104 = arith.mulf %102, %103 : vector<8x256xf32>
    %105 = tpu.concatenate %81, %84, %87, %90, %92, %95, %98, %101, %104 in 0 : vector<8x256xf32>, vector<8x256xf32>, vector<8x256xf32>, vector<8x256xf32>, vector<8x256xf32>, vector<8x256xf32>, vector<8x256xf32>, vector<8x256xf32>, vector<8x256xf32> -> vector<72x256xf32>
    %cst_61 = arith.constant dense<0.000000e+00> : vector<8x256xf32>
    %106 = tpu.matmul %10, %105, %cst_61 {dimension_numbers = #tpu.dot_dimension_numbers<[1], [0], [0], [1], [0, 0, 1, 1], [], []>} : vector<8x72xf32>, vector<72x256xf32>, vector<8x256xf32> -> vector<8x256xf32>
    %107 = vector.broadcast %11 : vector<8x1xf32> to vector<8x256xf32>
    %108 = arith.addf %106, %107 : vector<8x256xf32>
    %cst_62 = arith.constant 0.000000e+00 : f32
    %109 = vector.broadcast %cst_62 : f32 to vector<8x256xf32>
    %110 = arith.maximumf %108, %109 : vector<8x256xf32>
    %cst_63 = arith.constant dense<0.000000e+00> : vector<1x256xf32>
    %111 = tpu.matmul %6, %110, %cst_63 {dimension_numbers = #tpu.dot_dimension_numbers<[1], [0], [0], [1], [0, 0, 1, 1], [], []>} : vector<1x8xf32>, vector<8x256xf32>, vector<1x256xf32> -> vector<1x256xf32>
    %112 = vector.broadcast %7 : vector<1x1xf32> to vector<1x256xf32>
    %113 = arith.addf %111, %112 : vector<1x256xf32>
    %114 = vector.broadcast %41 : vector<32x1xf32> to vector<32x256xf32>
    %115 = vector.broadcast %113 : vector<1x256xf32> to vector<32x256xf32>
    %116 = arith.mulf %114, %115 : vector<32x256xf32>
    %117 = arith.negf %116 : vector<32x256xf32>
    %118 = math.exp %117 : vector<32x256xf32>
    %cst_64 = arith.constant 1.000000e+00 : f32
    %119 = vector.broadcast %cst_64 : f32 to vector<32x256xf32>
    %120 = arith.addf %119, %118 : vector<32x256xf32>
    %121 = arith.divf %119, %120 : vector<32x256xf32>
    %cst_65 = arith.constant 1.000000e+00 : f32
    %122 = vector.broadcast %cst_65 : f32 to vector<32x256xf32>
    %123 = arith.addf %121, %122 : vector<32x256xf32>
    %c0_66 = arith.constant 0 : index
    %c0_67 = arith.constant 0 : index
    %c0_68 = arith.constant 0 : index
    %124 = vector.load %arg15[%c0_66, %c0_67, %c0_68] : memref<2x32x256xf32, #tpu.memory_space<vmem>>, vector<1x32x256xf32>
    %125 = vector.shape_cast %124 : vector<1x32x256xf32> to vector<32x256xf32>
    %126 = vector.shape_cast %123 : vector<32x256xf32> to vector<1x32x256xf32>
    tpu.vector_store %arg15[%c0_66, %c0_67, %c0_68], %126 {strides = array<i32>} : memref<2x32x256xf32, #tpu.memory_space<vmem>>, vector<1x32x256xf32>,
    %c1_69 = arith.constant 1 : index
    %c0_70 = arith.constant 0 : index
    %c0_71 = arith.constant 0 : index
    %127 = vector.load %arg1[%c1_69, %c0_70, %c0_71] : memref<2x32x256xf32, #tpu.memory_space<vmem>>, vector<1x32x256xf32>
    %128 = vector.shape_cast %127 : vector<1x32x256xf32> to vector<32x256xf32>
    %cst_72 = arith.constant dense<0.000000e+00> : vector<32xf32>
    %129 = vector.multi_reduction <add>, %128, %cst_72 [1] : vector<32x256xf32> to vector<32xf32>
    %130 = vector.shape_cast %129 : vector<32xf32> to vector<32x1xf32>
    %cst_73 = arith.constant 2.560000e+02 : f32
    %131 = vector.broadcast %cst_73 : f32 to vector<32x1xf32>
    %132 = arith.divf %130, %131 : vector<32x1xf32>
    %cst_74 = arith.constant dense<0.000000e+00> : vector<8x1xf32>
    %133 = tpu.matmul %0, %132, %cst_74 {dimension_numbers = #tpu.dot_dimension_numbers<[1], [0], [0], [1], [0, 0, 1, 1], [], []>} : vector<8x32xf32>, vector<32x1xf32>, vector<8x1xf32> -> vector<8x1xf32>
    %134 = arith.addf %133, %1 : vector<8x1xf32>
    %cst_75 = arith.constant 0.000000e+00 : f32
    %135 = vector.broadcast %cst_75 : f32 to vector<8x1xf32>
    %136 = arith.maximumf %134, %135 : vector<8x1xf32>
    %cst_76 = arith.constant dense<0.000000e+00> : vector<32x1xf32>
    %137 = tpu.matmul %2, %136, %cst_76 {dimension_numbers = #tpu.dot_dimension_numbers<[1], [0], [0], [1], [0, 0, 1, 1], [], []>} : vector<32x8xf32>, vector<8x1xf32>, vector<32x1xf32> -> vector<32x1xf32>
    %138 = arith.addf %137, %3 : vector<32x1xf32>
    %cst_77 = arith.constant dense<0.000000e+00> : vector<8x256xf32>
    %139 = tpu.matmul %4, %128, %cst_77 {dimension_numbers = #tpu.dot_dimension_numbers<[1], [0], [0], [1], [0, 0, 1, 1], [], []>} : vector<8x32xf32>, vector<32x256xf32>, vector<8x256xf32> -> vector<8x256xf32>
    %140 = vector.broadcast %5 : vector<8x1xf32> to vector<8x256xf32>
    %141 = arith.addf %139, %140 : vector<8x256xf32>
    %cst_78 = arith.constant 0.000000e+00 : f32
    %142 = vector.broadcast %cst_78 : f32 to vector<8x256xf32>
    %143 = arith.maximumf %141, %142 : vector<8x256xf32>
    %c68_i32_79 = arith.constant 68 : i32
    %144 = tpu.dynamic_rotate %143 by %c68_i32_79 dim 1 : vector<8x256xf32>, i32 -> vector<8x256xf32>
    %145 = vector.broadcast %13 : vector<1x256xf32> to vector<8x256xf32>
    %146 = arith.mulf %144, %145 : vector<8x256xf32>
    %c64_i32_80 = arith.constant 64 : i32
    %147 = tpu.dynamic_rotate %143 by %c64_i32_80 dim 1 : vector<8x256xf32>, i32 -> vector<8x256xf32>
    %148 = vector.broadcast %15 : vector<1x256xf32> to vector<8x256xf32>
    %149 = arith.mulf %147, %148 : vector<8x256xf32>
    %c60_i32_81 = arith.constant 60 : i32
    %150 = tpu.dynamic_rotate %143 by %c60_i32_81 dim 1 : vector<8x256xf32>, i32 -> vector<8x256xf32>
    %151 = vector.broadcast %17 : vector<1x256xf32> to vector<8x256xf32>
    %152 = arith.mulf %150, %151 : vector<8x256xf32>
    %c4_i32_82 = arith.constant 4 : i32
    %153 = tpu.dynamic_rotate %143 by %c4_i32_82 dim 1 : vector<8x256xf32>, i32 -> vector<8x256xf32>
    %154 = vector.broadcast %19 : vector<1x256xf32> to vector<8x256xf32>
    %155 = arith.mulf %153, %154 : vector<8x256xf32>
    %156 = vector.broadcast %21 : vector<1x256xf32> to vector<8x256xf32>
    %157 = arith.mulf %143, %156 : vector<8x256xf32>
    %c252_i32_83 = arith.constant 252 : i32
    %158 = tpu.dynamic_rotate %143 by %c252_i32_83 dim 1 : vector<8x256xf32>, i32 -> vector<8x256xf32>
    %159 = vector.broadcast %23 : vector<1x256xf32> to vector<8x256xf32>
    %160 = arith.mulf %158, %159 : vector<8x256xf32>
    %c196_i32_84 = arith.constant 196 : i32
    %161 = tpu.dynamic_rotate %143 by %c196_i32_84 dim 1 : vector<8x256xf32>, i32 -> vector<8x256xf32>
    %162 = vector.broadcast %25 : vector<1x256xf32> to vector<8x256xf32>
    %163 = arith.mulf %161, %162 : vector<8x256xf32>
    %c192_i32_85 = arith.constant 192 : i32
    %164 = tpu.dynamic_rotate %143 by %c192_i32_85 dim 1 : vector<8x256xf32>, i32 -> vector<8x256xf32>
    %165 = vector.broadcast %27 : vector<1x256xf32> to vector<8x256xf32>
    %166 = arith.mulf %164, %165 : vector<8x256xf32>
    %c188_i32_86 = arith.constant 188 : i32
    %167 = tpu.dynamic_rotate %143 by %c188_i32_86 dim 1 : vector<8x256xf32>, i32 -> vector<8x256xf32>
    %168 = vector.broadcast %29 : vector<1x256xf32> to vector<8x256xf32>
    %169 = arith.mulf %167, %168 : vector<8x256xf32>
    %170 = tpu.concatenate %146, %149, %152, %155, %157, %160, %163, %166, %169 in 0 : vector<8x256xf32>, vector<8x256xf32>, vector<8x256xf32>, vector<8x256xf32>, vector<8x256xf32>, vector<8x256xf32>, vector<8x256xf32>, vector<8x256xf32>, vector<8x256xf32> -> vector<72x256xf32>
    %cst_87 = arith.constant dense<0.000000e+00> : vector<8x256xf32>
    %171 = tpu.matmul %8, %170, %cst_87 {dimension_numbers = #tpu.dot_dimension_numbers<[1], [0], [0], [1], [0, 0, 1, 1], [], []>} : vector<8x72xf32>, vector<72x256xf32>, vector<8x256xf32> -> vector<8x256xf32>
    %172 = vector.broadcast %9 : vector<8x1xf32> to vector<8x256xf32>
    %173 = arith.addf %171, %172 : vector<8x256xf32>
    %cst_88 = arith.constant 0.000000e+00 : f32
    %174 = vector.broadcast %cst_88 : f32 to vector<8x256xf32>
    %175 = arith.maximumf %173, %174 : vector<8x256xf32>
    %c68_i32_89 = arith.constant 68 : i32
    %176 = tpu.dynamic_rotate %175 by %c68_i32_89 dim 1 : vector<8x256xf32>, i32 -> vector<8x256xf32>
    %177 = vector.broadcast %13 : vector<1x256xf32> to vector<8x256xf32>
    %178 = arith.mulf %176, %177 : vector<8x256xf32>
    %c64_i32_90 = arith.constant 64 : i32
    %179 = tpu.dynamic_rotate %175 by %c64_i32_90 dim 1 : vector<8x256xf32>, i32 -> vector<8x256xf32>
    %180 = vector.broadcast %15 : vector<1x256xf32> to vector<8x256xf32>
    %181 = arith.mulf %179, %180 : vector<8x256xf32>
    %c60_i32_91 = arith.constant 60 : i32
    %182 = tpu.dynamic_rotate %175 by %c60_i32_91 dim 1 : vector<8x256xf32>, i32 -> vector<8x256xf32>
    %183 = vector.broadcast %17 : vector<1x256xf32> to vector<8x256xf32>
    %184 = arith.mulf %182, %183 : vector<8x256xf32>
    %c4_i32_92 = arith.constant 4 : i32
    %185 = tpu.dynamic_rotate %175 by %c4_i32_92 dim 1 : vector<8x256xf32>, i32 -> vector<8x256xf32>
    %186 = vector.broadcast %19 : vector<1x256xf32> to vector<8x256xf32>
    %187 = arith.mulf %185, %186 : vector<8x256xf32>
    %188 = vector.broadcast %21 : vector<1x256xf32> to vector<8x256xf32>
    %189 = arith.mulf %175, %188 : vector<8x256xf32>
    %c252_i32_93 = arith.constant 252 : i32
    %190 = tpu.dynamic_rotate %175 by %c252_i32_93 dim 1 : vector<8x256xf32>, i32 -> vector<8x256xf32>
    %191 = vector.broadcast %23 : vector<1x256xf32> to vector<8x256xf32>
    %192 = arith.mulf %190, %191 : vector<8x256xf32>
    %c196_i32_94 = arith.constant 196 : i32
    %193 = tpu.dynamic_rotate %175 by %c196_i32_94 dim 1 : vector<8x256xf32>, i32 -> vector<8x256xf32>
    %194 = vector.broadcast %25 : vector<1x256xf32> to vector<8x256xf32>
    %195 = arith.mulf %193, %194 : vector<8x256xf32>
    %c192_i32_95 = arith.constant 192 : i32
    %196 = tpu.dynamic_rotate %175 by %c192_i32_95 dim 1 : vector<8x256xf32>, i32 -> vector<8x256xf32>
    %197 = vector.broadcast %27 : vector<1x256xf32> to vector<8x256xf32>
    %198 = arith.mulf %196, %197 : vector<8x256xf32>
    %c188_i32_96 = arith.constant 188 : i32
    %199 = tpu.dynamic_rotate %175 by %c188_i32_96 dim 1 : vector<8x256xf32>, i32 -> vector<8x256xf32>
    %200 = vector.broadcast %29 : vector<1x256xf32> to vector<8x256xf32>
    %201 = arith.mulf %199, %200 : vector<8x256xf32>
    %202 = tpu.concatenate %178, %181, %184, %187, %189, %192, %195, %198, %201 in 0 : vector<8x256xf32>, vector<8x256xf32>, vector<8x256xf32>, vector<8x256xf32>, vector<8x256xf32>, vector<8x256xf32>, vector<8x256xf32>, vector<8x256xf32>, vector<8x256xf32> -> vector<72x256xf32>
    %cst_97 = arith.constant dense<0.000000e+00> : vector<8x256xf32>
    %203 = tpu.matmul %10, %202, %cst_97 {dimension_numbers = #tpu.dot_dimension_numbers<[1], [0], [0], [1], [0, 0, 1, 1], [], []>} : vector<8x72xf32>, vector<72x256xf32>, vector<8x256xf32> -> vector<8x256xf32>
    %204 = vector.broadcast %11 : vector<8x1xf32> to vector<8x256xf32>
    %205 = arith.addf %203, %204 : vector<8x256xf32>
    %cst_98 = arith.constant 0.000000e+00 : f32
    %206 = vector.broadcast %cst_98 : f32 to vector<8x256xf32>
    %207 = arith.maximumf %205, %206 : vector<8x256xf32>
    %cst_99 = arith.constant dense<0.000000e+00> : vector<1x256xf32>
    %208 = tpu.matmul %6, %207, %cst_99 {dimension_numbers = #tpu.dot_dimension_numbers<[1], [0], [0], [1], [0, 0, 1, 1], [], []>} : vector<1x8xf32>, vector<8x256xf32>, vector<1x256xf32> -> vector<1x256xf32>
    %209 = vector.broadcast %7 : vector<1x1xf32> to vector<1x256xf32>
    %210 = arith.addf %208, %209 : vector<1x256xf32>
    %211 = vector.broadcast %138 : vector<32x1xf32> to vector<32x256xf32>
    %212 = vector.broadcast %210 : vector<1x256xf32> to vector<32x256xf32>
    %213 = arith.mulf %211, %212 : vector<32x256xf32>
    %214 = arith.negf %213 : vector<32x256xf32>
    %215 = math.exp %214 : vector<32x256xf32>
    %cst_100 = arith.constant 1.000000e+00 : f32
    %216 = vector.broadcast %cst_100 : f32 to vector<32x256xf32>
    %217 = arith.addf %216, %215 : vector<32x256xf32>
    %218 = arith.divf %216, %217 : vector<32x256xf32>
    %cst_101 = arith.constant 1.000000e+00 : f32
    %219 = vector.broadcast %cst_101 : f32 to vector<32x256xf32>
    %220 = arith.addf %218, %219 : vector<32x256xf32>
    %c1_102 = arith.constant 1 : index
    %c0_103 = arith.constant 0 : index
    %c0_104 = arith.constant 0 : index
    %221 = vector.load %arg15[%c1_102, %c0_103, %c0_104] : memref<2x32x256xf32, #tpu.memory_space<vmem>>, vector<1x32x256xf32>
    %222 = vector.shape_cast %221 : vector<1x32x256xf32> to vector<32x256xf32>
    %223 = vector.shape_cast %220 : vector<32x256xf32> to vector<1x32x256xf32>
    tpu.vector_store %arg15[%c1_102, %c0_103, %c0_104], %223 {strides = array<i32>} : memref<2x32x256xf32, #tpu.memory_space<vmem>>, vector<1x32x256xf32>,
    return
  }
  func.func @transform_0(%arg0: i32) -> (i32, i32, i32) {
    %c0_i32 = arith.constant 0 : i32
    %c0_i32_0 = arith.constant 0 : i32
    %c0_i32_1 = arith.constant 0 : i32
    return %arg0, %c0_i32, %c0_i32_0 : i32, i32, i32
  }
  func.func @transform_1(%arg0: i32) -> (i32, i32) {
    %c0_i32 = arith.constant 0 : i32
    %c0_i32_0 = arith.constant 0 : i32
    %c0_i32_1 = arith.constant 0 : i32
    return %c0_i32, %c0_i32_0 : i32, i32
  }
  func.func @transform_2(%arg0: i32) -> (i32, i32) {
    %c0_i32 = arith.constant 0 : i32
    %c0_i32_0 = arith.constant 0 : i32
    %c0_i32_1 = arith.constant 0 : i32
    return %c0_i32, %c0_i32_0 : i32, i32
  }
  func.func @transform_3(%arg0: i32) -> (i32, i32) {
    %c0_i32 = arith.constant 0 : i32
    %c0_i32_0 = arith.constant 0 : i32
    %c0_i32_1 = arith.constant 0 : i32
    return %c0_i32, %c0_i32_0 : i32, i32
  }
  func.func @transform_4(%arg0: i32) -> (i32, i32) {
    %c0_i32 = arith.constant 0 : i32
    %c0_i32_0 = arith.constant 0 : i32
    %c0_i32_1 = arith.constant 0 : i32
    return %c0_i32, %c0_i32_0 : i32, i32
  }
  func.func @transform_5(%arg0: i32) -> (i32, i32) {
    %c0_i32 = arith.constant 0 : i32
    %c0_i32_0 = arith.constant 0 : i32
    %c0_i32_1 = arith.constant 0 : i32
    return %c0_i32, %c0_i32_0 : i32, i32
  }
  func.func @transform_6(%arg0: i32) -> (i32, i32) {
    %c0_i32 = arith.constant 0 : i32
    %c0_i32_0 = arith.constant 0 : i32
    %c0_i32_1 = arith.constant 0 : i32
    return %c0_i32, %c0_i32_0 : i32, i32
  }
  func.func @transform_7(%arg0: i32) -> (i32, i32, i32) {
    %c0_i32 = arith.constant 0 : i32
    %c0_i32_0 = arith.constant 0 : i32
    %c0_i32_1 = arith.constant 0 : i32
    %c0_i32_2 = arith.constant 0 : i32
    return %c0_i32, %c0_i32_0, %c0_i32_1 : i32, i32, i32
  }
  func.func @transform_8(%arg0: i32) -> (i32, i32) {
    %c0_i32 = arith.constant 0 : i32
    %c0_i32_0 = arith.constant 0 : i32
    %c0_i32_1 = arith.constant 0 : i32
    return %c0_i32, %c0_i32_0 : i32, i32
  }
  func.func @transform_9(%arg0: i32) -> (i32, i32) {
    %c0_i32 = arith.constant 0 : i32
    %c0_i32_0 = arith.constant 0 : i32
    %c0_i32_1 = arith.constant 0 : i32
    return %c0_i32, %c0_i32_0 : i32, i32
  }
  func.func @transform_10(%arg0: i32) -> (i32, i32) {
    %c0_i32 = arith.constant 0 : i32
    %c0_i32_0 = arith.constant 0 : i32
    %c0_i32_1 = arith.constant 0 : i32
    return %c0_i32, %c0_i32_0 : i32, i32
  }
  func.func @transform_11(%arg0: i32) -> (i32, i32) {
    %c0_i32 = arith.constant 0 : i32
    %c0_i32_0 = arith.constant 0 : i32
    %c0_i32_1 = arith.constant 0 : i32
    return %c0_i32, %c0_i32_0 : i32, i32
  }
  func.func @transform_12(%arg0: i32) -> (i32, i32) {
    %c0_i32 = arith.constant 0 : i32
    %c0_i32_0 = arith.constant 0 : i32
    %c0_i32_1 = arith.constant 0 : i32
    return %c0_i32, %c0_i32_0 : i32, i32
  }
  func.func @transform_13(%arg0: i32) -> (i32, i32) {
    %c0_i32 = arith.constant 0 : i32
    %c0_i32_0 = arith.constant 0 : i32
    %c0_i32_1 = arith.constant 0 : i32
    return %c0_i32, %c0_i32_0 : i32, i32
  }
  func.func @transform_14(%arg0: i32) -> (i32, i32, i32) {
    %c0_i32 = arith.constant 0 : i32
    %c0_i32_0 = arith.constant 0 : i32
    %c0_i32_1 = arith.constant 0 : i32
    return %arg0, %c0_i32, %c0_i32_0 : i32, i32, i32
  }
}

</mosaic_0001>

<bundles_post_ra>
// kernel: tpu_custom_call.1
= control target key start
LH: loop header
LB: loop body
LE: loop exit
PB: predicated region body
PF: predicated region fallthrough
CT: control target
= control target key end

     0   :  { %s2483_s0 = inlined_call_operand.hbm [shape: f32[2,32,256], index: 0, kind: input, shape index: {}]   ;;  %s2484_s1 = inlined_call_operand.vmem [shape: f32[8,32], index: 1, kind: input, shape index: {}]   ;;  %s2485_s2 = inlined_call_operand.vmem [shape: f32[8,1], index: 2, kind: input, shape index: {}]   ;;  %s2486_s3 = inlined_call_operand.vmem [shape: f32[32,8], index: 3, kind: input, shape index: {}]   ;;  %s2487_s4 = inlined_call_operand.vmem [shape: f32[32,1], index: 4, kind: input, shape index: {}]   ;;  %s2488_s5 = inlined_call_operand.vmem [shape: f32[8,32], index: 5, kind: input, shape index: {}]   ;;  %s2489_s6 = inlined_call_operand.vmem [shape: f32[8,1], index: 6, kind: input, shape index: {}]   ;;  %s2490_s7 = inlined_call_operand.vmem [shape: f32[9,1,256], index: 7, kind: input, shape index: {}]   ;;  %s2491_s8 = inlined_call_operand.vmem [shape: f32[8,72], index: 8, kind: input, shape index: {}]   ;;  %s2492_s9 = inlined_call_operand.vmem [shape: f32[8,1], index: 9, kind: input, shape index: {}]   ;;  %s2493_s10 = inlined_call_operand.vmem [shape: f32[8,72], index: 10, kind: input, shape index: {}]   ;;  %s2494_s11 = inlined_call_operand.vmem [shape: f32[8,1], index: 11, kind: input, shape index: {}]   ;;  %s2495_s12 = inlined_call_operand.vmem [shape: f32[1,8], index: 12, kind: input, shape index: {}]   ;;  %s2496_s13 = inlined_call_operand.<no memory space> [shape: f32[1,1], index: 13, kind: input, shape index: {}]   ;;  %s2497_s14 = inlined_call_operand.hbm [shape: f32[2,32,256], index: 14, kind: output, shape index: {}]  }
   0x1   :  { %v19_v0 = vstv %s2496_s13 }
   0x2   :  { %20 = vst [vmem:[#allocation2] sm:$0x1] %v19_v0 }
   0x3   :  { %21 = vsyncpa [#allocation4], 0 }
   0x4   :  { %22 = vsyncpa [#allocation5], 0  ;;  %s1833_s15 = smov [#allocation3]  }
   0x5   :  { %s28_s16 = sshll.u32 %s1833_s15, 4  ;;  %s29_s16 = int_to_ptr.vmem [resolvable:$true] %s28_s16 }
   0x6   :  { %s1797_s17 = scalar_lea.vmem %s29_s16, 2048  ;;  %p1802_p1 = scmp.lt.s32.totalorder %s29_s16, %s29_s16 }
   0x7   :  { %p1798_p0 = scmp.ne.s32.totalorder %s29_s16, %s1797_s17  ;;  %p1803_p2 = scmp.lt.s32.totalorder %s1797_s17, %s1797_s17 }
   0x9   :  { %p1804_p3 = por %p1803_p2, %p1802_p1 }
   0xb   :  { %p1805_p4 = pnand %p1804_p3, %p1798_p0 }
   0xd   :  { %1808 = shalt.err (!%p1805_p4)
}
   0xe   :  { %s1834_s18 = smov 256   ;;  %s1835_s19 = smov 16  }
   0xf   :  { %34 = dma.hbm_to_vmem [thread:$0]  %s2483_s0, 2048, %s29_s16, [#allocation4], %s1834_s18, %s1834_s18, %s1835_s19  }
  0x10   :  { %1829 = dma.done.wait [#allocation4], 2048  }
  0x11   :  { %1830 = vsyncadd [#allocation4], 4294965248  ;;  %v105_v1 = vld [vmem:[#allocation3 + $0x30] sm:$0xff]  ;;  %v106_v2 = vld [vmem:[#allocation3 + $0x38] sm:$0xff]  ;;  %v2498_v13 = vmov 0.0   ;;  %vm1837_vm0 = vmmov 0   ;;  %v382_v52 = vlaneseq }
  0x12   :  { %v103_v3 = vld [vmem:[#allocation3 + $0x20] sm:$0xff]  ;;  %v116_v4 = vadd.f32 %v106_v2, %v105_v1  ;;  %v104_v5 = vld [vmem:[#allocation3 + $0x28] sm:$0xff]  ;;  %v101_v6 = vld [vmem:[#allocation3 + $0x10] sm:$0xff]  ;;  %1673 = vmatprep.subr.mxu0 %v2498_v13  ;;  %1681 = vmatprep.mubr.msk.f32.mxu0 %vm1837_vm0, %v2498_v13  ;;  %vm124_vm1 = vcmask 261120   ;;  %vm199_vm2 = vcmask 64512   ;;  %v1838_v25 = vmov 0  }
  0x13   :  { %v102_v7 = vld [vmem:[#allocation3 + $0x18] sm:$0xff]  ;;  %v99_v9 = vld [vmem:[#allocation3] sm:$0xff]  ;;  %v100_v10 = vld [vmem:[#allocation3 + $0x8] sm:$0xff]  ;;  %v113_v11 = vadd.f32 %v104_v5, %v103_v3  ;;  %1723 = vset.pattern.permute.xlu0 %v1838_v25  ;;  %1724 = vset.pattern.permute.xlu1 %v1838_v25  ;;  %s1841_s13 = smov 64   ;;  %s1842_s0 = smov 68   ;;  %v389_v54 = vshrl.u32 %v382_v52, 7 }
  0x14   :  { %v110_v8 = vadd.f32 %v102_v7, %v101_v6  ;;  %117 = vadd.xlane.f32.xlu0 %v116_v4  ;;  %v107_v12 = vadd.f32 %v100_v10, %v99_v9  ;;  %v1937_v22 = vld [vmem:[%s2484_s1] sm:$0xff]  ;;  %v1962_v31 = vld [vmem:[%s2486_s3 + $0x8] sm:$0xff]  ;;  %v1967_v32 = vld [vmem:[%s2486_s3 + $0x10] sm:$0xff]  ;;  %s1843_s21 = smov 124   ;;  %v2034_v55 = vand.u32 127, %v382_v52  ;;  %vm537_vm8 = vcmask 588800  }
  0x15   :  { %v1946_v23 = vld [vmem:[%s2486_s3] sm:$0xff]  ;;  %v1976_v33 = vld [vmem:[%s2486_s3 + $0x18] sm:$0xff]  ;;  %s1839_s3 = smov 4   ;;  %v1618_v56 = vld [vmem:[%s2490_s7 + $0x10] sm:$0x3]  ;;  %v2039_v58 = vsub.s32 0, %v389_v54 }
  0x16   :  { %111 = vadd.xlane.f32.xlu1 %v110_v8  ;;  %1686 = vmatprep.mubr.msk.f32.mxu1 %vm199_vm2, %v1946_v23  ;;  %v75_v24 = vld [vmem:[%s2489_s6] sm:$0xff]  ;;  %v2028_v47 = vld [vmem:[#allocation3 + $0x70] sm:$0xff]  ;;  %v2041_v59 = vsub.s32 1, %v389_v54  ;;  %vm424_vm3 = vcmp.lt.s32.totalorder %v2034_v55, 60  ;;  %v1617_v62 = vld [vmem:[%s2490_s7 + $0xe] sm:$0x3] }
  0x17   :  { %v1956_v26 = vld [vmem:[%s2485_s2] sm:$0xff]  ;;  %v2045_v60 = vrot.slane %v1618_v56, %v2039_v58  ;;  %vm404_vm4 = vcmp.lt.s32.totalorder %v2034_v55, 64  ;;  %v2064_v4 = vrot.slane %v1617_v62, %v2039_v58  ;;  %vm384_vm5 = vcmp.lt.s32.totalorder %v2034_v55, 68  ;;  %v1614_v25 = vld [vmem:[%s2490_s7 + $0x8] sm:$0x3] }
  0x18   :  { %114 = vadd.xlane.f32.xlu0 %v113_v11  ;;  %v1984_v34 = vld [vmem:[%s2488_s5] sm:$0xff]  ;;  %s1840_s5 = smov 60   ;;  %v2048_v61 = vrot.slane %v1618_v56, %v2041_v59  ;;  %vm477_vm6 = vcmp.lt.s32.totalorder %v2034_v55, 124  ;;  %vm444_vm7 = vcmp.lt.s32.totalorder %v2034_v55, 4 }
  0x19   :  { %v79_v43 = vld [vmem:[%s2492_s9] sm:$0xff] }
  0x1a   :  { %108 = vadd.xlane.f32.xlu1 %v107_v12  ;;  %v2030_v48 = vld [vmem:[#allocation3 + $0x78] sm:$0xff] }
  0x1b   :  { %v944_v49 = vadd.f32 %v2030_v48, %v2028_v47 }
  0x2e   :  { %299 = vperm.xlu0 %1723, %v75_v24  }
  0x9d   :  { %v118_v14 = vpop.xlane.xlu0 %117 }
  0x9e   :  { %v123_v15 = vmul.f32 0.00390625, %v118_v14 }
  0x9f   :  { %v112_v16 = vpop.xlane.xlu1 %111 }
  0xa0   :  { %1674 = vmatpush3.msra.mxu0 %v123_v15  ;;  %v121_v20 = vmul.f32 0.00390625, %v112_v16  ;;  %v1615_v15 = vld [vmem:[%s2490_s7 + $0xa] sm:$0x3] }
  0xa1   :  { %v115_v17 = vpop.xlane.xlu0 %114  ;;  %1675 = vmatprep.subr.mxu0 %v2498_v13  ;;  %v2099_v24 = vrot.slane %v1615_v15, %v2041_v59 }
  0xa2   :  { %v122_v18 = vmul.f32 0.00390625, %v115_v17 }
  0xa3   :  { %v109_v19 = vpop.xlane.xlu1 %108 }
  0xa4   :  { %1676 = vmatpush3.msra.mxu0 %v122_v18  ;;  %v120_v21 = vmul.f32 0.00390625, %v109_v19 }
  0xa5   :  { %1677 = vmatprep.subr.mxu0 %v2498_v13 }
  0xa6   :  { %1678 = vmatpush3.msra.mxu0 %v121_v20 }
  0xa7   :  { %1679 = vmatprep.subr.mxu0 %v2498_v13 }
  0xa8   :  { %1680 = vmatpush3.msra.mxu0 %v120_v21  ;;  %v2096_v21 = vrot.slane %v1615_v15, %v2039_v58 }
  0xa9   :  { %1682 = vmatmul.mubr.msk.f32.vlgmr.msra.gmra.mxu0 %vm124_vm1, %v1937_v22  ;;  %v1997_v39 = vpop.permute.xlu0 %299 }
  0xaa   :  { %605 = vmatprep.mubr.f32.mxu0 %v2498_v13 }
 0x169   :  { %v194_v27 = vpop.f32.mrf.mxu0 }
 0x16a   :  { %v195_v28 = vadd.f32 %v194_v27, %v1956_v26  ;;  %v1613_v27 = vld [vmem:[%s2490_s7 + $0x6] sm:$0x3] }
 0x16b   :  { %v1683_v29 = vpop.f32.mrf.mxu0 }
 0x16c   :  { %v198_v30 = vmax.f32 %v195_v28, 0.0  ;;  %v2108_v29 = vrot.slane %v1614_v25, %v2041_v59 }
 0x16e   :  { %1684 = vmatprep.subr.mxu1 %v198_v30 }
 0x16f   :  { %1685 = vmatpush3.msra.mxu1 %v198_v30  ;;  %v1612_v30 = vld [vmem:[%s2490_s7 + $0x4] sm:$0x3] }
 0x170   :  { %1687 = vmatmul.mubr.msk.f32.vlgmr.msra.gmra.mxu1 %vm199_vm2, %v1962_v31  ;;  %329 = vmatprep.subr.mxu1 %v106_v2 }
 0x171   :  { %330 = vmatpush1.msra.mxu1 %v105_v1  ;;  %1689 = vmatprep.mubr.msk.f32.mxu1 %vm199_vm2, %v1967_v32 }
 0x172   :  { %331 = vmatprep.subr.mxu1 %v104_v5  ;;  %v2067_v5 = vrot.slane %v1617_v62, %v2041_v59  ;;  %v82_v62 = vld [vmem:[%s2490_s7] sm:$0x3] }
 0x173   :  { %332 = vmatpush1.msra.mxu1 %v103_v3  ;;  %v2159_v15 = vrot.slane %v82_v62, %v2041_v59 }
 0x174   :  { %1690 = vmatmul.mubr.msk.f32.gmra.mxu1 %vm199_vm2, %v1976_v33  ;;  %333 = vmatprep.subr.mxu1 %v102_v7 }
 0x175   :  { %334 = vmatpush1.msra.mxu1 %v101_v6  ;;  %369 = vmatprep.mubr.f32.mxu1 %v2498_v13  ;;  %v1616_v6 = vld [vmem:[%s2490_s7 + $0xc] sm:$0x3] }
 0x176   :  { %335 = vmatprep.subr.mxu1 %v100_v10  ;;  %v2080_v12 = vrot.slane %v1616_v6, %v2039_v58  ;;  %v2083_v14 = vrot.slane %v1616_v6, %v2041_v59 }
 0x177   :  { %336 = vmatpush1.msra.mxu1 %v99_v9 }
 0x178   :  { %1624 = vmatmul.mubr.msk.f32.vlgmr.msra.gmra.mxu1 %vm124_vm1, %v1984_v34 }
 0x179   :  { %734 = vmatprep.mubr.f32.mxu1 %v2498_v13 }
 0x230   :  { %v1989_v35 = vpop.f32.mrf.mxu1 }
 0x232   :  { %v1991_v36 = vpop.f32.mrf.mxu1 }
 0x234   :  { %v1993_v37 = vpop.f32.mrf.mxu1 }
 0x236   :  { %v1995_v38 = vpop.f32.mrf.mxu1 }
 0x238   :  { %v371_v40 = vpop.f32.mrf.mxu1 }
 0x239   :  { %v372_v41 = vadd.f32 %v371_v40, %v1997_v39 }
 0x23a   :  { %v373_v44 = vpop.f32.mrf.mxu1 }
 0x23b   :  { %v2000_v42 = vmax.f32 %v372_v41, 0.0  ;;  %v374_v45 = vadd.f32 %v373_v44, %v1997_v39 }
 0x23d   :  { %440 = vrot.lane.b32.xlu0 %v2000_v42, %s1839_s3  ;;  %420 = vrot.lane.b32.xlu1 %v2000_v42, %s1840_s5  ;;  %v2016_v46 = vmax.f32 %v374_v45, 0.0 }
 0x23f   :  { %v472_v56 = vmul.f32 %v2108_v29, %v2016_v46 }
 0x241   :  { %534 = vperm.xlu0 %1723, %v79_v43   ;;  %400 = vrot.lane.b32.xlu1 %v2000_v42, %s1841_s13  ;;  %v2119_v43 = vrot.slane %v1614_v25, %v2039_v58 }
 0x245   :  { %378 = vrot.lane.b32.xlu1 %v2000_v42, %s1842_s0 }
 0x249   :  { %473 = vrot.lane.b32.xlu1 %v2000_v42, %s1843_s21 }
 0x24d   :  { %422 = vrot.lane.b32.xlu1 %v2016_v46, %s1840_s5 }
 0x251   :  { %402 = vrot.lane.b32.xlu1 %v2016_v46, %s1841_s13 }
 0x255   :  { %380 = vrot.lane.b32.xlu1 %v2016_v46, %s1842_s0 }
 0x259   :  { %475 = vrot.lane.b32.xlu1 %v2016_v46, %s1843_s21 }
 0x25d   :  { %442 = vrot.lane.b32.xlu1 %v2016_v46, %s1839_s3 }
 0x281   :  { %945 = vadd.xlane.f32.xlu1 %v944_v49  ;;  %v2124_v49 = vrot.slane %v1613_v27, %v2039_v58 }
 0x2af   :  { %v421_v50 = vpop.permute.xlu1 %420  ;;  %v441_v52 = vpop.permute.xlu0 %440 }
 0x2b3   :  { %v401_v51 = vpop.permute.xlu1 %400 }
 0x2b7   :  { %v379_v53 = vpop.permute.xlu1 %378 }
 0x2bb   :  { %v474_v57 = vpop.permute.xlu1 %473 }
 0x2bf   :  { %v423_v63 = vpop.permute.xlu1 %422 }
 0x2c0   :  { %v425_v0 = vsel %vm424_vm3, %v421_v50, %v423_v63  ;;  %v2057_v1 = vsel %vm424_vm3, %v423_v63, %v421_v50  ;;  %v2127_v50 = vrot.slane %v1613_v27, %v2041_v59 }
 0x2c1   :  { %v530_v2 = vmul.f32 %v2045_v60, %v425_v0  ;;  %v531_v3 = vmul.f32 %v2048_v61, %v2057_v1 }
 0x2c3   :  { %555 = vmatprep.subr.mxu0 %v531_v3  ;;  %v403_v7 = vpop.permute.xlu1 %402  ;;  %v471_v3 = vmul.f32 %v2119_v43, %v2000_v42 }
 0x2c4   :  { %v405_v8 = vsel %vm404_vm4, %v401_v51, %v403_v7  ;;  %v406_v9 = vsel %vm404_vm4, %v403_v7, %v401_v51  ;;  %556 = vmatpush1.msra.mxu0 %v530_v2  ;;  %v1611_v51 = vld [vmem:[%s2490_s7 + $0x2] sm:$0x3] }
 0x2c5   :  { %v517_v10 = vmul.f32 %v2064_v4, %v405_v8  ;;  %v518_v11 = vmul.f32 %v2067_v5, %v406_v9  ;;  %v2150_v6 = vrot.slane %v1611_v51, %v2041_v59 }
 0x2c7   :  { %557 = vmatprep.subr.mxu0 %v518_v11  ;;  %v381_v16 = vpop.permute.xlu1 %380 }
 0x2c8   :  { %v385_v17 = vsel %vm384_vm5, %v379_v53, %v381_v16  ;;  %v386_v18 = vsel %vm384_vm5, %v381_v16, %v379_v53  ;;  %558 = vmatpush1.msra.mxu0 %v517_v10  ;;  %v2133_v53 = vrot.slane %v1612_v30, %v2041_v59  ;;  %v2155_v10 = vrot.slane %v1611_v51, %v2039_v58  ;;  %v2209_v51 = vld [vmem:[#allocation3 + $0x40] sm:$0xff] }
 0x2c9   :  { %v504_v19 = vmul.f32 %v2080_v12, %v385_v17  ;;  %v505_v20 = vmul.f32 %v2083_v14, %v386_v18  ;;  %v2164_v16 = vrot.slane %v82_v62, %v2039_v58  ;;  %v399_v25 = vmul.f32 %v2159_v15, %v385_v17  ;;  %v81_v62 = vld [vmem:[%s2494_s11] sm:$0xff] }
 0x2ca   :  { %v439_v11 = vmul.f32 %v2133_v53, %v425_v0  ;;  %v2173_v0 = vld [vmem:[%s2491_s8] sm:$0xff] }
 0x2cb   :  { %559 = vmatprep.subr.mxu0 %v505_v20  ;;  %v476_v28 = vpop.permute.xlu1 %475  ;;  %v418_v20 = vmul.f32 %v2155_v10, %v406_v9  ;;  %v398_v59 = vmul.f32 %v2164_v16, %v386_v18 }
 0x2cc   :  { %v478_v40 = vsel %vm477_vm6, %v474_v57, %v476_v28  ;;  %v479_v41 = vsel %vm477_vm6, %v476_v28, %v474_v57  ;;  %560 = vmatpush1.msra.mxu0 %v504_v19  ;;  %v2138_v57 = vrot.slane %v1612_v30, %v2039_v58  ;;  %v419_v19 = vmul.f32 %v2150_v6, %v405_v8  ;;  %v2199_v30 = vld [vmem:[#allocation3 + $0x50] sm:$0xff] }
 0x2cd   :  { %v491_v44 = vmul.f32 %v2096_v21, %v478_v40  ;;  %v492_v45 = vmul.f32 %v2099_v24, %v479_v41  ;;  %v2201_v40 = vld [vmem:[#allocation3 + $0x58] sm:$0xff]  ;;  %v2203_v41 = vld [vmem:[#allocation3 + $0x60] sm:$0xff] }
 0x2ce   :  { %v438_v42 = vmul.f32 %v2138_v57, %v2057_v1  ;;  %v2178_v1 = vpop.permute.xlu0 %534 }
 0x2cf   :  { %561 = vmatprep.subr.mxu0 %v492_v45  ;;  %v443_v54 = vpop.permute.xlu1 %442  ;;  %v938_v45 = vadd.f32 %v2201_v40, %v2199_v30 }
 0x2d0   :  { %v445_v63 = vsel %vm444_vm7, %v441_v52, %v443_v54  ;;  %v446_v2 = vsel %vm444_vm7, %v443_v54, %v441_v52  ;;  %562 = vmatpush1.msra.mxu0 %v491_v44  ;;  %v2205_v44 = vld [vmem:[#allocation3 + $0x68] sm:$0xff] }
 0x2d1   :  { %v458_v46 = vmul.f32 %v2124_v49, %v446_v2  ;;  %v459_v7 = vmul.f32 %v2127_v50, %v445_v63  ;;  %563 = vmatprep.subr.mxu0 %v472_v56  ;;  %v2211_v52 = vld [vmem:[#allocation3 + $0x48] sm:$0xff]  ;;  %v941_v54 = vadd.f32 %v2205_v44, %v2203_v41 }
 0x2d2   :  { %564 = vmatpush1.msra.mxu0 %v471_v3  ;;  %v935_v56 = vadd.f32 %v2211_v52, %v2209_v51 }
 0x2d3   :  { %565 = vmatprep.subr.mxu0 %v459_v7 }
 0x2d4   :  { %566 = vmatpush1.msra.mxu0 %v458_v46 }
 0x2d5   :  { %567 = vmatprep.subr.mxu0 %v439_v11 }
 0x2d6   :  { %568 = vmatpush1.msra.mxu0 %v438_v42 }
 0x2d7   :  { %569 = vmatprep.subr.mxu0 %v419_v19 }
 0x2d8   :  { %570 = vmatpush1.msra.mxu0 %v418_v20 }
 0x2d9   :  { %571 = vmatprep.subr.mxu0 %v399_v25 }
 0x2da   :  { %572 = vmatpush1.msra.mxu0 %v398_v59 }
 0x2db   :  { %1625 = vmatmul.mubr.msk.f32.vlgmr.msra.gmra.mxu0 %vm537_vm8, %v2173_v0 }
 0x2dc   :  { %819 = vmatprep.mubr.f32.mxu0 %v2498_v13 }
 0x30a   :  { %v946_v63 = vpop.xlane.xlu1 %945 }
 0x39b   :  { %v607_v8 = vpop.f32.mrf.mxu0 }
 0x39c   :  { %v608_v9 = vadd.f32 %v607_v8, %v2178_v1 }
 0x39d   :  { %v609_v17 = vpop.f32.mrf.mxu0 }
 0x39e   :  { %v2181_v18 = vmax.f32 %v608_v9, 0.0  ;;  %v610_v27 = vadd.f32 %v609_v17, %v2178_v1 }
 0x3a0   :  { %638 = vrot.lane.b32.xlu0 %v2181_v18, %s1839_s3  ;;  %630 = vrot.lane.b32.xlu1 %v2181_v18, %s1840_s5  ;;  %v613_v28 = vmax.f32 %v610_v27, 0.0  ;;  %v646_v13 = vmul.f32 %v2181_v18, %v2119_v43 }
 0x3a4   :  { %632 = vrot.lane.b32.xlu0 %v613_v28, %s1840_s5  ;;  %622 = vrot.lane.b32.xlu1 %v2181_v18, %s1841_s13 }
 0x3a8   :  { %624 = vrot.lane.b32.xlu0 %v613_v28, %s1841_s13  ;;  %614 = vrot.lane.b32.xlu1 %v2181_v18, %s1842_s0 }
 0x3ac   :  { %616 = vrot.lane.b32.xlu0 %v613_v28, %s1842_s0  ;;  %648 = vrot.lane.b32.xlu1 %v2181_v18, %s1843_s21 }
 0x3b0   :  { %650 = vrot.lane.b32.xlu0 %v613_v28, %s1843_s21 }
 0x3b4   :  { %640 = vrot.lane.b32.xlu0 %v613_v28, %s1839_s3 }
 0x3d0   :  { %939 = vadd.xlane.f32.xlu1 %v938_v45 }
 0x3d3   :  { %942 = vadd.xlane.f32.xlu0 %v941_v54 }
 0x3d4   :  { %936 = vadd.xlane.f32.xlu1 %v935_v56 }
 0x3e9   :  { %664 = vperm.xlu0 %1723, %v81_v62  }
 0x412   :  { %v639_v2 = vpop.permute.xlu0 %638  ;;  %v631_v3 = vpop.permute.xlu1 %630 }
 0x416   :  { %v633_v46 = vpop.permute.xlu0 %632  ;;  %v623_v7 = vpop.permute.xlu1 %622 }
 0x417   :  { %v634_v11 = vsel %vm424_vm3, %v631_v3, %v633_v46  ;;  %v635_v42 = vsel %vm424_vm3, %v633_v46, %v631_v3 }
 0x418   :  { %v660_v19 = vmul.f32 %v634_v11, %v2045_v60  ;;  %v661_v20 = vmul.f32 %v635_v42, %v2048_v61 }
 0x41a   :  { %v625_v25 = vpop.permute.xlu0 %624  ;;  %684 = vmatprep.subr.mxu1 %v661_v20  ;;  %v615_v27 = vpop.permute.xlu1 %614 }
 0x41b   :  { %v626_v59 = vsel %vm404_vm4, %v623_v7, %v625_v25  ;;  %v627_v8 = vsel %vm404_vm4, %v625_v25, %v623_v7  ;;  %685 = vmatpush1.msra.mxu1 %v660_v19 }
 0x41c   :  { %v658_v9 = vmul.f32 %v626_v59, %v2064_v4  ;;  %v659_v17 = vmul.f32 %v627_v8, %v2067_v5 }
 0x41e   :  { %v617_v45 = vpop.permute.xlu0 %616  ;;  %686 = vmatprep.subr.mxu1 %v659_v17  ;;  %v649_v46 = vpop.permute.xlu1 %648 }
 0x41f   :  { %v618_v54 = vsel %vm384_vm5, %v615_v27, %v617_v45  ;;  %v619_v56 = vsel %vm384_vm5, %v617_v45, %v615_v27  ;;  %687 = vmatpush1.msra.mxu1 %v658_v9  ;;  %v647_v9 = vmul.f32 %v613_v28, %v2108_v29  ;;  %v636_v28 = vmul.f32 %v635_v42, %v2138_v57 }
 0x420   :  { %v656_v62 = vmul.f32 %v618_v54, %v2080_v12  ;;  %v657_v3 = vmul.f32 %v619_v56, %v2083_v14  ;;  %v621_v18 = vmul.f32 %v618_v54, %v2159_v15  ;;  %v2500_v42 = vmov 0.0  }
 0x422   :  { %v651_v7 = vpop.permute.xlu0 %650  ;;  %688 = vmatprep.subr.mxu1 %v657_v3 }
 0x423   :  { %v652_v19 = vsel %vm477_vm6, %v649_v46, %v651_v7  ;;  %v653_v20 = vsel %vm477_vm6, %v651_v7, %v649_v46  ;;  %689 = vmatpush1.msra.mxu1 %v656_v62  ;;  %v637_v7 = vmul.f32 %v634_v11, %v2133_v53  ;;  %v950_v11 = vmul.f32 0.00390625, %v946_v63 }
 0x424   :  { %v654_v25 = vmul.f32 %v652_v19, %v2096_v21  ;;  %v655_v17 = vmul.f32 %v653_v20, %v2099_v24  ;;  %v629_v19 = vmul.f32 %v626_v59, %v2150_v6  ;;  %v620_v20 = vmul.f32 %v619_v56, %v2164_v16 }
 0x426   :  { %v641_v27 = vpop.permute.xlu0 %640  ;;  %690 = vmatprep.subr.mxu1 %v655_v17 }
 0x427   :  { %v642_v45 = vsel %vm444_vm7, %v639_v2, %v641_v27  ;;  %v643_v3 = vsel %vm444_vm7, %v641_v27, %v639_v2  ;;  %691 = vmatpush1.msra.mxu1 %v654_v25  ;;  %v628_v2 = vmul.f32 %v627_v8, %v2155_v10 }
 0x428   :  { %v644_v62 = vmul.f32 %v643_v3, %v2124_v49  ;;  %v645_v46 = vmul.f32 %v642_v45, %v2127_v50  ;;  %692 = vmatprep.subr.mxu1 %v647_v9 }
 0x429   :  { %693 = vmatpush1.msra.mxu1 %v646_v13  ;;  %v2262_v13 = vld [vmem:[%s2493_s10] sm:$0xff] }
 0x42a   :  { %694 = vmatprep.subr.mxu1 %v645_v46 }
 0x42b   :  { %695 = vmatpush1.msra.mxu1 %v644_v62 }
 0x42c   :  { %696 = vmatprep.subr.mxu1 %v637_v7  ;;  %v2282_v7 = vld [vmem:[%s2495_s12] sm:$0x1] }
 0x42d   :  { %697 = vmatpush1.msra.mxu1 %v636_v28 }
 0x42e   :  { %698 = vmatprep.subr.mxu1 %v629_v19 }
 0x42f   :  { %699 = vmatpush1.msra.mxu1 %v628_v2 }
 0x430   :  { %700 = vmatprep.subr.mxu1 %v621_v18 }
 0x431   :  { %701 = vmatpush1.msra.mxu1 %v620_v20 }
 0x432   :  { %1626 = vmatmul.mubr.msk.f32.vlgmr.msra.gmra.mxu1 %vm537_vm8, %v2262_v13  ;;  %1692 = vmatprep.subr.mxu1 %v2500_v42 }
 0x433   :  { %1693 = vmatpush3.msra.mxu1 %v950_v11  ;;  %1700 = vmatprep.mubr.msk.f32.mxu1 %vm1837_vm0, %v2500_v42 }
 0x434   :  { %1694 = vmatprep.subr.mxu1 %v2500_v42 }
 0x459   :  { %v940_v59 = vpop.xlane.xlu1 %939 }
 0x45a   :  { %v948_v25 = vmul.f32 0.00390625, %v940_v59 }
 0x45c   :  { %v943_v8 = vpop.xlane.xlu0 %942 }
 0x45d   :  { %v949_v54 = vmul.f32 0.00390625, %v943_v8  ;;  %v937_v56 = vpop.xlane.xlu1 %936 }
 0x45e   :  { %v947_v17 = vmul.f32 0.00390625, %v937_v56 }
 0x45f   :  { %1695 = vmatpush3.msra.mxu1 %v949_v54 }
 0x460   :  { %1696 = vmatprep.subr.mxu1 %v2500_v42 }
 0x461   :  { %1697 = vmatpush3.msra.mxu1 %v948_v25 }
 0x462   :  { %1698 = vmatprep.subr.mxu1 %v2500_v42 }
 0x463   :  { %1699 = vmatpush3.msra.mxu1 %v947_v17 }
 0x464   :  { %1701 = vmatmul.mubr.msk.f32.vlgmr.msra.gmra.mxu1 %vm124_vm1, %v1937_v22  ;;  %v2275_v27 = vpop.permute.xlu0 %664 }
 0x465   :  { %1292 = vmatprep.mubr.f32.mxu1 %v2500_v42 }
 0x4f2   :  { %v736_v63 = vpop.f32.mrf.mxu1 }
 0x4f3   :  { %v737_v9 = vadd.f32 %v736_v63, %v2275_v27 }
 0x4f4   :  { %v738_v45 = vpop.f32.mrf.mxu1 }
 0x4f5   :  { %v739_v3 = vadd.f32 %v738_v45, %v2275_v27  ;;  %v741_v46 = vmax.f32 %v737_v9, 0.0 }
 0x4f7   :  { %v742_v62 = vmax.f32 %v739_v3, 0.0 }
 0x4f9   :  { %785 = vmatprep.subr.mxu0 %v742_v62 }
 0x4fa   :  { %786 = vmatpush1.msra.mxu0 %v741_v46 }
 0x4fb   :  { %1627 = vmatmul.mubr.msk.f32.vlgmr.msra.gmra.mxu0 %vm199_vm2, %v2282_v7 }
 0x4fc   :  { %1705 = vmatprep.mubr.msk.f32.mxu0 %vm199_vm2, %v1946_v23 }
 0x524   :  { %v1017_v22 = vpop.f32.mrf.mxu1 }
 0x525   :  { %v1018_v28 = vadd.f32 %v1017_v22, %v1956_v26 }
 0x526   :  { %v1702_v19 = vpop.f32.mrf.mxu1 }
 0x527   :  { %v1021_v2 = vmax.f32 %v1018_v28, 0.0 }
 0x529   :  { %1703 = vmatprep.subr.mxu0 %v1021_v2 }
 0x52a   :  { %1704 = vmatpush3.msra.mxu0 %v1021_v2 }
 0x52b   :  { %1706 = vmatmul.mubr.msk.f32.vlgmr.msra.gmra.mxu0 %vm199_vm2, %v1962_v31  ;;  %1131 = vmatprep.subr.mxu0 %v2030_v48 }
 0x52c   :  { %1132 = vmatpush1.msra.mxu0 %v2028_v47  ;;  %1708 = vmatprep.mubr.msk.f32.mxu0 %vm199_vm2, %v1967_v32 }
 0x52d   :  { %1133 = vmatprep.subr.mxu0 %v2205_v44 }
 0x52e   :  { %1134 = vmatpush1.msra.mxu0 %v2203_v41 }
 0x52f   :  { %1709 = vmatmul.mubr.msk.f32.gmra.mxu0 %vm199_vm2, %v1976_v33  ;;  %1135 = vmatprep.subr.mxu0 %v2201_v40 }
 0x530   :  { %1136 = vmatpush1.msra.mxu0 %v2199_v30  ;;  %1171 = vmatprep.mubr.f32.mxu0 %v2500_v42 }
 0x531   :  { %1137 = vmatprep.subr.mxu0 %v2211_v52 }
 0x532   :  { %1138 = vmatpush1.msra.mxu0 %v2209_v51 }
 0x533   :  { %1641 = vmatmul.mubr.msk.f32.vlgmr.msra.gmra.mxu0 %vm124_vm1, %v1984_v34 }
 0x534   :  { %1413 = vmatprep.mubr.f32.mxu0 %v2500_v42 }
 0x5bb   :  { %v2307_v23 = vpop.f32.mrf.mxu0 }
 0x5bd   :  { %v2309_v26 = vpop.f32.mrf.mxu0 }
 0x5eb   :  { %v2311_v31 = vpop.f32.mrf.mxu0 }
 0x5ed   :  { %v2313_v32 = vpop.f32.mrf.mxu0 }
 0x5ef   :  { %v2315_v33 = vpop.f32.mrf.mxu0 }
 0x5f1   :  { %v2317_v47 = vpop.f32.mrf.mxu0 }
 0x5f3   :  { %v1173_v48 = vpop.f32.mrf.mxu0 }
 0x5f4   :  { %v1174_v30 = vadd.f32 %v1173_v48, %v1997_v39 }
 0x5f5   :  { %v1175_v40 = vpop.f32.mrf.mxu0 }
 0x5f6   :  { %v1178_v41 = vmax.f32 %v1174_v30, 0.0  ;;  %v1176_v34 = vadd.f32 %v1175_v40, %v1997_v39 }
 0x5f8   :  { %1188 = vrot.lane.b32.xlu0 %v1178_v41, %s1841_s13  ;;  %1196 = vrot.lane.b32.xlu1 %v1178_v41, %s1840_s5  ;;  %v1179_v44 = vmax.f32 %v1176_v34, 0.0 }
 0x5fc   :  { %1180 = vrot.lane.b32.xlu0 %v1178_v41, %s1842_s0  ;;  %1198 = vrot.lane.b32.xlu1 %v1179_v44, %s1840_s5 }
 0x600   :  { %1214 = vrot.lane.b32.xlu0 %v1178_v41, %s1843_s21  ;;  %1190 = vrot.lane.b32.xlu1 %v1179_v44, %s1841_s13 }
 0x604   :  { %1204 = vrot.lane.b32.xlu0 %v1178_v41, %s1839_s3  ;;  %1182 = vrot.lane.b32.xlu1 %v1179_v44, %s1842_s0 }
 0x608   :  { %1216 = vrot.lane.b32.xlu1 %v1179_v44, %s1843_s21 }
 0x60c   :  { %1206 = vrot.lane.b32.xlu1 %v1179_v44, %s1839_s3 }
 0x66a   :  { %v1197_v39 = vpop.permute.xlu1 %1196  ;;  %v1189_v51 = vpop.permute.xlu0 %1188 }
 0x66e   :  { %v1199_v52 = vpop.permute.xlu1 %1198  ;;  %v1181_v8 = vpop.permute.xlu0 %1180 }
 0x66f   :  { %v1200_v18 = vsel %vm424_vm3, %v1197_v39, %v1199_v52  ;;  %v1201_v20 = vsel %vm424_vm3, %v1199_v52, %v1197_v39  ;;  %v1213_v39 = vmul.f32 %v1179_v44, %v2108_v29 }
 0x670   :  { %v1226_v11 = vmul.f32 %v1200_v18, %v2045_v60  ;;  %v1227_v59 = vmul.f32 %v1201_v20, %v2048_v61  ;;  %v1202_v44 = vmul.f32 %v1201_v20, %v2138_v57 }
 0x672   :  { %1242 = vmatprep.subr.mxu1 %v1227_v59  ;;  %v1191_v54 = vpop.permute.xlu1 %1190  ;;  %v1215_v62 = vpop.permute.xlu0 %1214 }
 0x673   :  { %v1192_v56 = vsel %vm404_vm4, %v1189_v51, %v1191_v54  ;;  %v1193_v25 = vsel %vm404_vm4, %v1191_v54, %v1189_v51  ;;  %1243 = vmatpush1.msra.mxu1 %v1226_v11  ;;  %v1212_v11 = vmul.f32 %v1178_v41, %v2119_v43  ;;  %v1203_v54 = vmul.f32 %v1200_v18, %v2133_v53 }
 0x674   :  { %v1224_v17 = vmul.f32 %v1192_v56, %v2064_v4  ;;  %v1225_v63 = vmul.f32 %v1193_v25, %v2067_v5 }
 0x676   :  { %1244 = vmatprep.subr.mxu1 %v1225_v63  ;;  %v1183_v9 = vpop.permute.xlu1 %1182  ;;  %v1205_v40 = vpop.permute.xlu0 %1204  ;;  %v1194_v63 = vmul.f32 %v1193_v25, %v2155_v10 }
 0x677   :  { %v1184_v45 = vsel %vm384_vm5, %v1181_v8, %v1183_v9  ;;  %v1185_v3 = vsel %vm384_vm5, %v1183_v9, %v1181_v8  ;;  %1245 = vmatpush1.msra.mxu1 %v1224_v17  ;;  %v1195_v17 = vmul.f32 %v1192_v56, %v2150_v6 }
 0x678   :  { %v1222_v46 = vmul.f32 %v1184_v45, %v2080_v12  ;;  %v1223_v22 = vmul.f32 %v1185_v3, %v2083_v14  ;;  %v1187_v41 = vmul.f32 %v1184_v45, %v2159_v15  ;;  %v1186_v9 = vmul.f32 %v1185_v3, %v2164_v16 }
 0x67a   :  { %1246 = vmatprep.subr.mxu1 %v1223_v22  ;;  %v1217_v28 = vpop.permute.xlu1 %1216 }
 0x67b   :  { %v1218_v19 = vsel %vm477_vm6, %v1215_v62, %v1217_v28  ;;  %v1219_v2 = vsel %vm477_vm6, %v1217_v28, %v1215_v62  ;;  %1247 = vmatpush1.msra.mxu1 %v1222_v46  ;;  %v72_v46 = vld [vmem:[%s2487_s4 + $0x10] sm:$0xff]  ;;  %v73_v28 = vld [vmem:[%s2487_s4 + $0x18] sm:$0xff] }
 0x67c   :  { %v1220_v48 = vmul.f32 %v1218_v19, %v2096_v21  ;;  %v1221_v30 = vmul.f32 %v1219_v2, %v2099_v24  ;;  %v289_v19 = vadd.f32 %v1995_v38, %v72_v46  ;;  %v294_v2 = vadd.f32 %v1993_v37, %v73_v28 }
 0x67e   :  { %1248 = vmatprep.subr.mxu1 %v1221_v30  ;;  %v1207_v34 = vpop.permute.xlu1 %1206  ;;  %v1099_v30 = vadd.f32 %v2317_v47, %v72_v46 }
 0x67f   :  { %v1208_v51 = vsel %vm444_vm7, %v1205_v40, %v1207_v34  ;;  %v1209_v52 = vsel %vm444_vm7, %v1207_v34, %v1205_v40  ;;  %1249 = vmatpush1.msra.mxu1 %v1220_v48 }
 0x680   :  { %v1210_v59 = vmul.f32 %v1209_v52, %v2124_v49  ;;  %v1211_v8 = vmul.f32 %v1208_v51, %v2127_v50  ;;  %1250 = vmatprep.subr.mxu1 %v1213_v39 }
 0x681   :  { %1251 = vmatpush1.msra.mxu1 %v1212_v11 }
 0x682   :  { %1252 = vmatprep.subr.mxu1 %v1211_v8 }
 0x683   :  { %1253 = vmatpush1.msra.mxu1 %v1210_v59 }
 0x684   :  { %1254 = vmatprep.subr.mxu1 %v1203_v54 }
 0x685   :  { %1255 = vmatpush1.msra.mxu1 %v1202_v44 }
 0x686   :  { %1256 = vmatprep.subr.mxu1 %v1195_v17 }
 0x687   :  { %1257 = vmatpush1.msra.mxu1 %v1194_v63 }
 0x688   :  { %1258 = vmatprep.subr.mxu1 %v1187_v41 }
 0x689   :  { %1259 = vmatpush1.msra.mxu1 %v1186_v9 }
 0x68a   :  { %1642 = vmatmul.mubr.msk.f32.vlgmr.msra.gmra.mxu1 %vm537_vm8, %v2173_v0  ;;  %v70_v0 = vld [vmem:[%s2487_s4] sm:$0xff] }
 0x68b   :  { %1486 = vmatprep.mubr.f32.mxu1 %v2500_v42  ;;  %v71_v42 = vld [vmem:[%s2487_s4 + $0x8] sm:$0xff]  ;;  %v279_v3 = vadd.f32 %v1991_v36, %v70_v0  ;;  %v1089_v36 = vadd.f32 %v2313_v32, %v70_v0  ;;  %s1844_s4 = smov [#allocation6]  }
 0x68c   :  { %v284_v22 = vadd.f32 %v1989_v35, %v71_v42  ;;  %v1094_v48 = vadd.f32 %v2311_v31, %v71_v42  ;;  %v1104_v35 = vadd.f32 %v2315_v33, %v73_v28 }
 0x74a   :  { %v1294_v18 = vpop.f32.mrf.mxu1 }
 0x74b   :  { %v1295_v20 = vadd.f32 %v1294_v18, %v2178_v1 }
 0x74c   :  { %v1296_v56 = vpop.f32.mrf.mxu1 }
 0x74d   :  { %v2373_v62 = vmax.f32 %v1295_v20, 0.0  ;;  %v1297_v25 = vadd.f32 %v1296_v56, %v2178_v1  ;;  %v77_v1 = vld [vmem:[#allocation2] sm:$0x1] }
 0x74f   :  { %v2376_v45 = vmax.f32 %v1297_v25, 0.0  ;;  %1317 = vrot.lane.b32.xlu0 %v2373_v62, %s1840_s5  ;;  %v1333_v25 = vmul.f32 %v2373_v62, %v2119_v43 }
 0x751   :  { %1319 = vrot.lane.b32.xlu1 %v2376_v45, %s1840_s5 }
 0x753   :  { %1309 = vrot.lane.b32.xlu0 %v2373_v62, %s1841_s13 }
 0x755   :  { %1311 = vrot.lane.b32.xlu1 %v2376_v45, %s1841_s13 }
 0x757   :  { %1301 = vrot.lane.b32.xlu0 %v2373_v62, %s1842_s0 }
 0x759   :  { %1303 = vrot.lane.b32.xlu1 %v2376_v45, %s1842_s0 }
 0x75b   :  { %1335 = vrot.lane.b32.xlu0 %v2373_v62, %s1843_s21 }
 0x75d   :  { %1337 = vrot.lane.b32.xlu1 %v2376_v45, %s1843_s21 }
 0x75f   :  { %1325 = vrot.lane.b32.xlu0 %v2373_v62, %s1839_s3 }
 0x761   :  { %1327 = vrot.lane.b32.xlu1 %v2376_v45, %s1839_s3  ;;  %s1599_s3 = sshll.u32 %s1844_s4, 4  ;;  %s1600_s3 = int_to_ptr.vmem [resolvable:$true] %s1599_s3 }
 0x762   :  { %s1809_s28 = scalar_lea.vmem %s1600_s3, 2048  ;;  %p1814_p6 = scmp.lt.s32.totalorder %s1600_s3, %s1600_s3 }
 0x763   :  { %745 = vperm.xlu0 %1723, %v77_v1   ;;  %p1810_p5 = scmp.ne.s32.totalorder %s1600_s3, %s1809_s28  ;;  %p1815_p7 = scmp.lt.s32.totalorder %s1809_s28, %s1809_s28 }
 0x765   :  { %828 = vperm.xlu1 %1724, %v279_v3   ;;  %p1816_p8 = por %p1815_p7, %p1814_p6 }
 0x767   :  { %833 = vperm.xlu0 %1723, %v284_v22   ;;  %p1817_p9 = pnand %p1816_p8, %p1810_p5 }
 0x769   :  { %838 = vperm.xlu1 %1724, %v289_v19  }
 0x76b   :  { %843 = vperm.xlu0 %1723, %v294_v2  }
 0x76d   :  { %1495 = vperm.xlu1 %1724, %v1089_v36  }
 0x76f   :  { %1500 = vperm.xlu0 %1723, %v1094_v48  }
 0x771   :  { %1505 = vperm.xlu1 %1724, %v1099_v30  }
 0x773   :  { %1510 = vperm.xlu0 %1723, %v1104_v35  }
 0x7c1   :  { %v1318_v40 = vpop.permute.xlu0 %1317 }
 0x7c3   :  { %v1320_v34 = vpop.permute.xlu1 %1319 }
 0x7c4   :  { %v1321_v38 = vsel %vm424_vm3, %v1318_v40, %v1320_v34  ;;  %v1322_v37 = vsel %vm424_vm3, %v1320_v34, %v1318_v40 }
 0x7c5   :  { %v1347_v32 = vmul.f32 %v1321_v38, %v2045_v60  ;;  %v1348_v31 = vmul.f32 %v1322_v37, %v2048_v61  ;;  %v1310_v39 = vpop.permute.xlu0 %1309  ;;  %v1324_v0 = vmul.f32 %v1321_v38, %v2133_v53 }
 0x7c7   :  { %v1312_v51 = vpop.permute.xlu1 %1311  ;;  %1363 = vmatprep.subr.mxu0 %v1348_v31 }
 0x7c8   :  { %v1313_v33 = vsel %vm404_vm4, %v1310_v39, %v1312_v51  ;;  %v1314_v47 = vsel %vm404_vm4, %v1312_v51, %v1310_v39  ;;  %1364 = vmatpush1.msra.mxu0 %v1347_v32 }
 0x7c9   :  { %v1345_v52 = vmul.f32 %v1313_v33, %v2064_v4  ;;  %v1346_v11 = vmul.f32 %v1314_v47, %v2067_v5  ;;  %v1302_v59 = vpop.permute.xlu0 %1301  ;;  %v1315_v55 = vmul.f32 %v1314_v47, %v2155_v10 }
 0x7cb   :  { %v1304_v8 = vpop.permute.xlu1 %1303  ;;  %1365 = vmatprep.subr.mxu0 %v1346_v11 }
 0x7cc   :  { %v1305_v60 = vsel %vm384_vm5, %v1302_v59, %v1304_v8  ;;  %v1306_v61 = vsel %vm384_vm5, %v1304_v8, %v1302_v59  ;;  %1366 = vmatpush1.msra.mxu0 %v1345_v52 }
 0x7cd   :  { %v1343_v54 = vmul.f32 %v1305_v60, %v2080_v12  ;;  %v1344_v44 = vmul.f32 %v1306_v61, %v2083_v14  ;;  %v1336_v17 = vpop.permute.xlu0 %1335  ;;  %v1334_v12 = vmul.f32 %v2376_v45, %v2108_v29  ;;  %v1323_v29 = vmul.f32 %v1322_v37, %v2138_v57 }
 0x7ce   :  { %v1316_v45 = vmul.f32 %v1313_v33, %v2150_v6  ;;  %v1308_v43 = vmul.f32 %v1305_v60, %v2159_v15 }
 0x7cf   :  { %v1338_v63 = vpop.permute.xlu1 %1337  ;;  %1367 = vmatprep.subr.mxu0 %v1344_v44 }
 0x7d0   :  { %v1339_v4 = vsel %vm477_vm6, %v1336_v17, %v1338_v63  ;;  %v1340_v5 = vsel %vm477_vm6, %v1338_v63, %v1336_v17  ;;  %1368 = vmatpush1.msra.mxu0 %v1343_v54 }
 0x7d1   :  { %v1341_v41 = vmul.f32 %v1339_v4, %v2096_v21  ;;  %v1342_v9 = vmul.f32 %v1340_v5, %v2099_v24  ;;  %v1326_v18 = vpop.permute.xlu0 %1325 }
 0x7d3   :  { %v1328_v20 = vpop.permute.xlu1 %1327  ;;  %1369 = vmatprep.subr.mxu0 %v1342_v9 }
 0x7d4   :  { %v1329_v14 = vsel %vm444_vm7, %v1326_v18, %v1328_v20  ;;  %v1330_v56 = vsel %vm444_vm7, %v1328_v20, %v1326_v18  ;;  %1370 = vmatpush1.msra.mxu0 %v1341_v41 }
 0x7d5   :  { %v1331_v21 = vmul.f32 %v1330_v56, %v2124_v49  ;;  %v1332_v24 = vmul.f32 %v1329_v14, %v2127_v50  ;;  %1371 = vmatprep.subr.mxu0 %v1334_v12  ;;  %v1307_v49 = vmul.f32 %v1306_v61, %v2164_v16 }
 0x7d6   :  { %1372 = vmatpush1.msra.mxu0 %v1333_v25 }
 0x7d7   :  { %1373 = vmatprep.subr.mxu0 %v1332_v24 }
 0x7d8   :  { %1374 = vmatpush1.msra.mxu0 %v1331_v21 }
 0x7d9   :  { %1375 = vmatprep.subr.mxu0 %v1324_v0 }
 0x7da   :  { %1376 = vmatpush1.msra.mxu0 %v1323_v29 }
 0x7db   :  { %1377 = vmatprep.subr.mxu0 %v1316_v45 }
 0x7dc   :  { %1378 = vmatpush1.msra.mxu0 %v1315_v55 }
 0x7dd   :  { %1379 = vmatprep.subr.mxu0 %v1308_v43 }
 0x7de   :  { %v746_v50 = vpop.permute.xlu0 %745  ;;  %1380 = vmatpush1.msra.mxu0 %v1307_v49 }
 0x7df   :  { %v2459_v53 = vrot.slane %v746_v50, %v2039_v58  ;;  %1643 = vmatmul.mubr.msk.f32.vlgmr.msra.gmra.mxu0 %vm537_vm8, %v2262_v13 }
 0x7e0   :  { %v829_v57 = vpop.permute.xlu1 %828 }
 0x7e1   :  { %v822_v6 = vadd.f32 %v2307_v23, %v2459_v53  ;;  %v824_v10 = vadd.f32 %v2309_v26, %v2459_v53 }
 0x7e2   :  { %v834_v15 = vpop.permute.xlu0 %833 }
 0x7e3   :  { %v849_v16 = vrot.slane %v822_v6, %v2039_v58  ;;  %v853_v62 = vrot.slane %v824_v10, %v2039_v58 }
 0x7e4   :  { %v839_v1 = vpop.permute.xlu1 %838 }
 0x7e5   :  { %v854_v42 = vmul.f32 %v849_v16, %v829_v57  ;;  %v855_v3 = vmul.f32 %v853_v62, %v829_v57  ;;  %v856_v46 = vmul.f32 %v849_v16, %v834_v15  ;;  %v857_v22 = vmul.f32 %v853_v62, %v834_v15 }
 0x7e6   :  { %v858_v28 = vmul.f32 %v849_v16, %v839_v1  ;;  %v859_v19 = vmul.f32 %v853_v62, %v839_v1  ;;  %v844_v13 = vpop.permute.xlu0 %843 }
 0x7e7   :  { %v1628_v2 = vmul.f32 -1.442695, %v854_v42  ;;  %v1629_v36 = vmul.f32 -1.442695, %v855_v3  ;;  %v1630_v48 = vmul.f32 -1.442695, %v856_v46  ;;  %v860_v23 = vmul.f32 %v849_v16, %v844_v13 }
 0x7e8   :  { %v1631_v30 = vmul.f32 -1.442695, %v857_v22  ;;  %v861_v35 = vmul.f32 %v853_v62, %v844_v13  ;;  %v1632_v26 = vmul.f32 -1.442695, %v858_v28  ;;  %v1633_v40 = vmul.f32 -1.442695, %v859_v19  ;;  %v1496_v10 = vpop.permute.xlu1 %1495 }
 0x7e9   :  { %1725 = vpow2.f32 %v1628_v2  ;;  %v1634_v34 = vmul.f32 -1.442695, %v860_v23 }
 0x7ea   :  { %1727 = vpow2.f32 %v1629_v36  ;;  %v1635_v38 = vmul.f32 -1.442695, %v861_v35  ;;  %v1501_v15 = vpop.permute.xlu0 %1500 }
 0x7eb   :  { %1729 = vpow2.f32 %v1630_v48 }
 0x7ec   :  { %1731 = vpow2.f32 %v1631_v30  ;;  %v1506_v46 = vpop.permute.xlu1 %1505 }
 0x7ed   :  { %1733 = vpow2.f32 %v1632_v26 }
 0x7ee   :  { %1735 = vpow2.f32 %v1633_v40  ;;  %v1511_v22 = vpop.permute.xlu0 %1510 }
 0x7ef   :  { %1737 = vpow2.f32 %v1634_v34 }
 0x7f0   :  { %1739 = vpow2.f32 %v1635_v38 }
 0x7f6   :  { %v1726_v37 = vpop.eup %1725 }
 0x7f7   :  { %v1728_v32 = vpop.eup %1727  ;;  %v886_v31 = vadd.f32 1.0, %v1726_v37 }
 0x7f8   :  { %v1730_v39 = vpop.eup %1729  ;;  %v887_v51 = vadd.f32 1.0, %v1728_v32 }
 0x7f9   :  { %v1732_v33 = vpop.eup %1731  ;;  %1741 = vrcp.f32 %v886_v31  ;;  %v888_v47 = vadd.f32 1.0, %v1730_v39 }
 0x7fa   :  { %v1734_v52 = vpop.eup %1733  ;;  %1743 = vrcp.f32 %v887_v51  ;;  %v889_v11 = vadd.f32 1.0, %v1732_v33 }
 0x7fb   :  { %v1736_v59 = vpop.eup %1735  ;;  %1745 = vrcp.f32 %v888_v47  ;;  %v890_v8 = vadd.f32 1.0, %v1734_v52 }
 0x7fc   :  { %v1738_v60 = vpop.eup %1737  ;;  %1747 = vrcp.f32 %v889_v11  ;;  %v891_v61 = vadd.f32 1.0, %v1736_v59 }
 0x7fd   :  { %v1740_v54 = vpop.eup %1739  ;;  %1749 = vrcp.f32 %v890_v8  ;;  %v892_v44 = vadd.f32 1.0, %v1738_v60 }
 0x7fe   :  { %1751 = vrcp.f32 %v891_v61  ;;  %v893_v17 = vadd.f32 1.0, %v1740_v54 }
 0x7ff   :  { %1753 = vrcp.f32 %v892_v44 }
 0x800   :  { %1755 = vrcp.f32 %v893_v17 }
 0x806   :  { %v1742_v63 = vpop.eup %1741 }
 0x807   :  { %v1744_v4 = vpop.eup %1743  ;;  %v910_v5 = vadd.f32 1.0, %v1742_v63 }
 0x808   :  { %v1746_v41 = vpop.eup %1745  ;;  %v911_v9 = vadd.f32 1.0, %v1744_v4 }
 0x809   :  { %v1748_v18 = vpop.eup %1747  ;;  %918 = vst [vmem:[#allocation6] sm:$0xff] %v910_v5  ;;  %v912_v20 = vadd.f32 1.0, %v1746_v41 }
 0x80a   :  { %v1750_v12 = vpop.eup %1749  ;;  %919 = vst [vmem:[#allocation6 + $0x8] sm:$0xff] %v911_v9  ;;  %v913_v14 = vadd.f32 1.0, %v1748_v18 }
 0x80b   :  { %v1752_v56 = vpop.eup %1751  ;;  %920 = vst [vmem:[#allocation6 + $0x10] sm:$0xff] %v912_v20  ;;  %v914_v25 = vadd.f32 1.0, %v1750_v12 }
 0x80c   :  { %v1754_v21 = vpop.eup %1753  ;;  %921 = vst [vmem:[#allocation6 + $0x18] sm:$0xff] %v913_v14  ;;  %v915_v24 = vadd.f32 1.0, %v1752_v56 }
 0x80d   :  { %v1756_v0 = vpop.eup %1755  ;;  %922 = vst [vmem:[#allocation6 + $0x20] sm:$0xff] %v914_v25  ;;  %v916_v29 = vadd.f32 1.0, %v1754_v21 }
 0x80e   :  { %923 = vst [vmem:[#allocation6 + $0x28] sm:$0xff] %v915_v24  ;;  %v917_v45 = vadd.f32 1.0, %v1756_v0 }
 0x80f   :  { %924 = vst [vmem:[#allocation6 + $0x30] sm:$0xff] %v916_v29 }
 0x810   :  { %925 = vst [vmem:[#allocation6 + $0x38] sm:$0xff] %v917_v45 }
 0x89f   :  { %v1415_v55 = vpop.f32.mrf.mxu0 }
 0x8a0   :  { %v1416_v43 = vadd.f32 %v1415_v55, %v2275_v27 }
 0x8a1   :  { %v1417_v49 = vpop.f32.mrf.mxu0 }
 0x8a2   :  { %v1418_v50 = vadd.f32 %v1417_v49, %v2275_v27  ;;  %v1420_v6 = vmax.f32 %v1416_v43, 0.0 }
 0x8a4   :  { %v1421_v57 = vmax.f32 %v1418_v50, 0.0 }
 0x8a6   :  { %1452 = vmatprep.subr.mxu1 %v1421_v57 }
 0x8a7   :  { %1453 = vmatpush1.msra.mxu1 %v1420_v6 }
 0x8a8   :  { %1644 = vmatmul.mubr.msk.f32.vlgmr.msra.gmra.mxu1 %vm199_vm2, %v2282_v7 }
 0x968   :  { %v1488_v16 = vpop.f32.mrf.mxu1 }
 0x969   :  { %v1489_v62 = vadd.f32 %v1488_v16, %v2459_v53 }
 0x96a   :  { %v1490_v1 = vpop.f32.mrf.mxu1 }
 0x96b   :  { %v1516_v42 = vrot.slane %v1489_v62, %v2039_v58  ;;  %v1491_v3 = vadd.f32 %v1490_v1, %v2459_v53 }
 0x96d   :  { %v1521_v27 = vmul.f32 %v1516_v42, %v1496_v10  ;;  %v1523_v28 = vmul.f32 %v1516_v42, %v1501_v15  ;;  %v1525_v19 = vmul.f32 %v1516_v42, %v1506_v46  ;;  %v1527_v13 = vmul.f32 %v1516_v42, %v1511_v22 }
 0x96e   :  { %v1520_v2 = vrot.slane %v1491_v3, %v2039_v58 }
 0x96f   :  { %v1645_v36 = vmul.f32 -1.442695, %v1521_v27  ;;  %v1647_v7 = vmul.f32 -1.442695, %v1523_v28  ;;  %v1649_v48 = vmul.f32 -1.442695, %v1525_v19 }
 0x970   :  { %v1651_v23 = vmul.f32 -1.442695, %v1527_v13  ;;  %v1522_v30 = vmul.f32 %v1520_v2, %v1496_v10  ;;  %v1524_v35 = vmul.f32 %v1520_v2, %v1501_v15  ;;  %v1526_v26 = vmul.f32 %v1520_v2, %v1506_v46 }
 0x971   :  { %1757 = vpow2.f32 %v1645_v36  ;;  %v1528_v40 = vmul.f32 %v1520_v2, %v1511_v22 }
 0x972   :  { %1759 = vpow2.f32 %v1647_v7  ;;  %v1646_v34 = vmul.f32 -1.442695, %v1522_v30  ;;  %v1648_v53 = vmul.f32 -1.442695, %v1524_v35  ;;  %v1650_v38 = vmul.f32 -1.442695, %v1526_v26 }
 0x973   :  { %1761 = vpow2.f32 %v1649_v48  ;;  %v1652_v37 = vmul.f32 -1.442695, %v1528_v40 }
 0x974   :  { %1763 = vpow2.f32 %v1651_v23 }
 0x975   :  { %1765 = vpow2.f32 %v1646_v34 }
 0x976   :  { %1767 = vpow2.f32 %v1648_v53 }
 0x977   :  { %1769 = vpow2.f32 %v1650_v38 }
 0x978   :  { %1771 = vpow2.f32 %v1652_v37 }
 0x97e   :  { %v1758_v58 = vpop.eup %1757 }
 0x97f   :  { %v1760_v32 = vpop.eup %1759  ;;  %v1553_v31 = vadd.f32 1.0, %v1758_v58 }
 0x980   :  { %v1762_v39 = vpop.eup %1761  ;;  %v1555_v51 = vadd.f32 1.0, %v1760_v32 }
 0x981   :  { %v1764_v33 = vpop.eup %1763  ;;  %v1557_v47 = vadd.f32 1.0, %v1762_v39  ;;  %1773 = vrcp.f32 %v1553_v31 }
 0x982   :  { %v1766_v52 = vpop.eup %1765  ;;  %v1559_v11 = vadd.f32 1.0, %v1764_v33  ;;  %1775 = vrcp.f32 %v1555_v51 }
 0x983   :  { %v1768_v59 = vpop.eup %1767  ;;  %1777 = vrcp.f32 %v1557_v47  ;;  %v1554_v8 = vadd.f32 1.0, %v1766_v52 }
 0x984   :  { %v1770_v60 = vpop.eup %1769  ;;  %1779 = vrcp.f32 %v1559_v11  ;;  %v1556_v61 = vadd.f32 1.0, %v1768_v59 }
 0x985   :  { %v1772_v54 = vpop.eup %1771  ;;  %v1558_v44 = vadd.f32 1.0, %v1770_v60  ;;  %1781 = vrcp.f32 %v1554_v8 }
 0x986   :  { %v1560_v17 = vadd.f32 1.0, %v1772_v54  ;;  %1783 = vrcp.f32 %v1556_v61 }
 0x987   :  { %1785 = vrcp.f32 %v1558_v44 }
 0x988   :  { %1787 = vrcp.f32 %v1560_v17 }
 0x98e   :  { %v1774_v63 = vpop.eup %1773 }
 0x98f   :  { %v1776_v4 = vpop.eup %1775  ;;  %v1577_v5 = vadd.f32 1.0, %v1774_v63 }
 0x990   :  { %v1778_v41 = vpop.eup %1777  ;;  %v1579_v9 = vadd.f32 1.0, %v1776_v4 }
 0x991   :  { %v1780_v18 = vpop.eup %1779  ;;  %v1581_v20 = vadd.f32 1.0, %v1778_v41  ;;  %1586 = vst [vmem:[#allocation6 + $0x40] sm:$0xff] %v1577_v5 }
 0x992   :  { %v1782_v12 = vpop.eup %1781  ;;  %v1583_v14 = vadd.f32 1.0, %v1780_v18  ;;  %1588 = vst [vmem:[#allocation6 + $0x50] sm:$0xff] %v1579_v9 }
 0x993   :  { %v1784_v56 = vpop.eup %1783  ;;  %1590 = vst [vmem:[#allocation6 + $0x60] sm:$0xff] %v1581_v20  ;;  %v1578_v25 = vadd.f32 1.0, %v1782_v12 }
 0x994   :  { %v1786_v21 = vpop.eup %1785  ;;  %1592 = vst [vmem:[#allocation6 + $0x70] sm:$0xff] %v1583_v14  ;;  %v1580_v24 = vadd.f32 1.0, %v1784_v56 }
 0x995   :  { %v1788_v0 = vpop.eup %1787  ;;  %v1582_v29 = vadd.f32 1.0, %v1786_v21  ;;  %1587 = vst [vmem:[#allocation6 + $0x48] sm:$0xff] %v1578_v25 }
 0x996   :  { %v1584_v45 = vadd.f32 1.0, %v1788_v0  ;;  %1589 = vst [vmem:[#allocation6 + $0x58] sm:$0xff] %v1580_v24 }
 0x997   :  { %1591 = vst [vmem:[#allocation6 + $0x68] sm:$0xff] %v1582_v29 }
 0x998   :  { %1593 = vst [vmem:[#allocation6 + $0x78] sm:$0xff] %v1584_v45 }
 0x999   :  { %1820 = shalt.err (!%p1817_p9)
}
 0x99a   :  { %1605 = dma.vmem_to_hbm [thread:$0]  %s1600_s3, 2048, %s2497_s14, [#allocation5], %s1834_s18, %s1834_s18, %s1835_s19  }
 0x99b   :  { %1831 = dma.done.wait [#allocation5], 2048  }
 0x99c   :  { %1832 = vsyncadd [#allocation5], 4294965248 }
 0x99d   :  { %1609 = vsyncpa [#allocation4], 1 }
 0x99e   :  { %1610 = vsyncpa [#allocation5], 1 }

</bundles_post_ra>
